<compile_context>
chip_gen: v5e
topology: v5e:2x2
jax: 0.10.0
libtpu: 0.0.40
codegen_flags: <defaults>
</compile_context>

<pallas_src>
import functools

import jax
import jax.numpy as jnp
import numpy as np
from jax.experimental import pallas as pl
from jax.experimental.pallas import tpu as pltpu


def _round_up(v, m):
    return (v + m - 1) // m * m


def _vmem_capacity_bytes():
    try:
        return int(pltpu.get_tpu_info().vmem_capacity_bytes)
    except Exception:
        return 64 * 1024 * 1024          # conservative default (v7x per-TC size)


def _pick_token_tile(n):
    """Token tile: large enough to fill the MXU M-dim, small enough for VMEM.

    v5e/v6e (128 MiB VMEM) -> up to 1024 token rows/step; v7x (64 MiB) -> 512.
    """
    cap = _vmem_capacity_bytes()
    max_tile = 512 if cap <= 80 * 1024 * 1024 else 1024
    n16 = _round_up(n, 16)               # sublane multiple for bf16 activations
    return n16 if n16 <= max_tile else max_tile


def _logits_softmax_kernel(x_ref, y_ref, wq_ref, wk_ref, attn_ref, acc_ref, *,
                           scale, compute_dtype):
    """Pass 1: accumulate channel-attention logits over token tiles; softmax at end.

    x_ref: (tn, Cq)  y_ref: (tn, Ckv)  wq_ref: (Cq, Cq_p)  wk_ref: (Ckv, Ckv)
    attn_ref (out): (Cq_p, Ckv)        acc_ref (f32 scratch): (Cq_p, Ckv)
    """
    @pl.when(pl.program_id(1) == 0)
    def _():
        acc_ref[...] = jnp.zeros_like(acc_ref)

    xb = x_ref[...].astype(compute_dtype)
    yb = y_ref[...].astype(compute_dtype)
    q = jnp.dot(xb, wq_ref[...], preferred_element_type=jnp.float32)    # (tn, Cq_p)
    k = jnp.dot(yb, wk_ref[...], preferred_element_type=jnp.float32)    # (tn, Ckv)

    # logits += q^T @ k  (contract the token axis); bf16 MXU operands, f32 acc.
    acc_ref[...] += jax.lax.dot_general(
        q.astype(compute_dtype), k.astype(compute_dtype),
        dimension_numbers=(((0,), (0,)), ((), ())),
        preferred_element_type=jnp.float32)

    @pl.when(pl.program_id(1) == pl.num_programs(1) - 1)
    def _():
        # Scale applied to the small (Cq_p, Ckv) logits; f32 stable softmax.
        logits = acc_ref[...] * scale
        logits = logits - jnp.max(logits, axis=-1, keepdims=True)
        p = jnp.exp(logits)
        attn = p * pl.reciprocal(jnp.sum(p, axis=-1, keepdims=True), approx=True)
        attn_ref[...] = attn.astype(attn_ref.dtype)


def _context_proj_kernel(y_ref, attn_ref, wv_ref, wp_ref, bp_ref, o_ref, *,
                         compute_dtype):
    """Pass 2: v = y@WvT, ctx = contract_Ckv(v, attn), out = ctx@WpT + bias.

    y_ref: (tn, Ckv)  attn_ref: (Cq_p, Ckv)  wv_ref: (Ckv, Ckv)
    wp_ref: (Cq_p, Cq_p)  bp_ref: (1, Cq_p)  o_ref: (tn, Cq_p)
    """
    yb = y_ref[...].astype(compute_dtype)
    v = jnp.dot(yb, wv_ref[...], preferred_element_type=jnp.float32)     # (tn, Ckv)

    # ctx[n, q] = sum_k v[n, k] * attn[q, k]  ==  ((attn @ v^T)^T)[n, q]
    ctx = jax.lax.dot_general(
        v.astype(compute_dtype), attn_ref[...],
        dimension_numbers=(((1,), (1,)), ((), ())),
        preferred_element_type=jnp.float32)                              # (tn, Cq_p)

    out = jnp.dot(ctx.astype(compute_dtype), wp_ref[...],
                  preferred_element_type=jnp.float32) + bp_ref[...]
    o_ref[...] = out.astype(o_ref.dtype)


def _forward(x, y, wq_t, wk_t, wv_t, wp_t, bp_p, *, out_dtype, scale,
             compute_dtype, token_tile, single_buffer_weights):
    B, N_p, Cq = x.shape
    Ckv = y.shape[-1]
    Cq_p = wq_t.shape[-1]
    n_tiles = N_p // token_tile

    # Constant-index weights are fetched once -> single-buffer them when the
    # installed pallas honours pipeline_mode on top-level BlockSpecs.
    wkw = dict(pipeline_mode=pl.Buffered(1)) if single_buffer_weights else {}

    # Rough per-step VMEM footprint (advisory), generation-aware clamp.
    cd = jnp.dtype(compute_dtype).itemsize
    it = jnp.dtype(x.dtype).itemsize
    ot = jnp.dtype(out_dtype).itemsize
    p1 = (2 * token_tile * (Cq + Ckv) * it            # double-buffered x/y tiles
          + (Cq * Cq_p + Ckv * Ckv) * cd              # weights
          + 3 * Cq_p * Ckv * 4                        # attn block + f32 scratch
          + token_tile * (Cq_p + Ckv) * (4 + cd))     # q/k intermediates
    p2 = (2 * token_tile * Ckv * it + 2 * Cq_p * Ckv * cd
          + (Ckv * Ckv + Cq_p * Cq_p + Cq_p) * cd
          + 2 * token_tile * Cq_p * ot
          + token_tile * (Ckv + 2 * Cq_p) * 4)
    cap = _vmem_capacity_bytes()
    vmem_limit = int(min(max(2 * max(p1, p2), 32 * 1024 * 1024), int(cap * 0.75)))

    attn = pl.pallas_call(
        functools.partial(_logits_softmax_kernel, scale=scale,
                          compute_dtype=compute_dtype),
        out_shape=jax.ShapeDtypeStruct((B, Cq_p, Ckv), compute_dtype),
        grid=(B, n_tiles),
        in_specs=[
            pl.BlockSpec((pl.Squeezed(), token_tile, Cq), lambda b, n: (b, n, 0)),
            pl.BlockSpec((pl.Squeezed(), token_tile, Ckv), lambda b, n: (b, n, 0)),
            pl.BlockSpec((Cq, Cq_p), lambda b, n: (0, 0), **wkw),     # Wq^T (padded)
            pl.BlockSpec((Ckv, Ckv), lambda b, n: (0, 0), **wkw),     # Wk^T
        ],
        out_specs=pl.BlockSpec((pl.Squeezed(), Cq_p, Ckv), lambda b, n: (b, 0, 0)),
        scratch_shapes=[pltpu.VMEM((Cq_p, Ckv), jnp.float32)],
        compiler_params=pltpu.CompilerParams(
            dimension_semantics=("parallel", "arbitrary"),
            vmem_limit_bytes=vmem_limit),
    )(x, y, wq_t, wk_t)

    out_p = pl.pallas_call(
        functools.partial(_context_proj_kernel, compute_dtype=compute_dtype),
        out_shape=jax.ShapeDtypeStruct((B, N_p, Cq_p), out_dtype),
        grid=(B, n_tiles),
        in_specs=[
            pl.BlockSpec((pl.Squeezed(), token_tile, Ckv), lambda b, n: (b, n, 0)),
            pl.BlockSpec((pl.Squeezed(), Cq_p, Ckv), lambda b, n: (b, 0, 0)),
            pl.BlockSpec((Ckv, Ckv), lambda b, n: (0, 0), **wkw),     # Wv^T
            pl.BlockSpec((Cq_p, Cq_p), lambda b, n: (0, 0), **wkw),   # Wp^T (padded)
            pl.BlockSpec((1, Cq_p), lambda b, n: (0, 0), **wkw),      # bias (padded)
        ],
        out_specs=pl.BlockSpec((pl.Squeezed(), token_tile, Cq_p),
                               lambda b, n: (b, n, 0)),
        compiler_params=pltpu.CompilerParams(
            dimension_semantics=("parallel", "parallel"),
            vmem_limit_bytes=vmem_limit),
    )(y, attn, wv_t, wp_t, bp_p)

    return out_p


def channel_based_cross_attention(x, y, wq, wkv, wp, bp, *,
                                  compute_dtype=jnp.bfloat16, token_tile=None):
    """Forward pass of Channel_Based_CrossAttention.

    x: (B, N, Cq), y: (B, N, Ckv).  Weights in PyTorch nn.Linear layout
    (out_features, in_features): wq (Cq, Cq), wkv (2*Ckv, Ckv), wp (Cq, Cq);
    bp: (Cq,).  qkv_bias=False, proj_bias=True (module defaults).
    """
    B, N, Cq = x.shape
    By, Ny, Ckv = y.shape
    assert (B, N) == (By, Ny)
    out_dtype = x.dtype
    scale = float(Cq) ** -0.5            # head_dim == dim_q (num_heads == 1)

    # Lane-dense output channel dim: pad Cq to a multiple of 128.  Padded Wq
    # columns / Wp rows+cols / bias entries are zero -> padding is inert.
    Cq_p = _round_up(Cq, 128)
    dq = Cq_p - Cq

    # Token tiling + zero-padding of N; zero tokens contribute nothing to the
    # logits accumulation and their pass-2 outputs are sliced off.
    if token_tile is None:
        token_tile = _pick_token_tile(N)
    N_p = _round_up(N, token_tile)

    # Cast activations / weights to the bf16 MXU compute dtype up front.
    xc = x.astype(compute_dtype)
    yc = y.astype(compute_dtype)
    if N_p != N:
        xc = jnp.pad(xc, ((0, 0), (0, N_p - N), (0, 0)))
        yc = jnp.pad(yc, ((0, 0), (0, N_p - N), (0, 0)))

    wq_t = jnp.pad(wq.T, ((0, 0), (0, dq))).astype(compute_dtype)        # (Cq, Cq_p)
    wk_t = wkv[:Ckv, :].T.astype(compute_dtype)                          # (Ckv, Ckv)
    wv_t = wkv[Ckv:, :].T.astype(compute_dtype)                          # (Ckv, Ckv)
    wp_t = jnp.pad(wp.T, ((0, dq), (0, dq))).astype(compute_dtype)       # (Cq_p, Cq_p)
    bp_p = jnp.pad(bp.reshape(1, Cq), ((0, 0), (0, dq))).astype(jnp.float32)

    args = (xc, yc, wq_t, wk_t, wv_t, wp_t, bp_p)
    kwargs = dict(out_dtype=out_dtype, scale=scale, compute_dtype=compute_dtype,
                  token_tile=token_tile)
    try:
        out_p = _forward(*args, single_buffer_weights=True, **kwargs)
    except Exception:
        # pl.Buffered on top-level BlockSpecs is not honoured by every jax
        # release; fall back to default double-buffered weights (same math).
        out_p = _forward(*args, single_buffer_weights=False, **kwargs)

    return out_p[:, :N, :Cq]


def _reference(x, y, wq, wkv, wp, bp):
    """Pure-JAX f32 reference mirroring the PyTorch forward exactly."""
    B, N, Cq = x.shape
    Ckv = y.shape[-1]
    scale = float(Cq) ** -0.5
    q = jnp.einsum("bnc,oc->bno", x, wq) * scale           # (B, N, Cq)
    kv = jnp.einsum("bnc,oc->bno", y, wkv)                 # (B, N, 2*Ckv)
    kv = kv.reshape(B, N, 2, Ckv).transpose(2, 0, 1, 3)
    k, v = kv[0], kv[1]
    qT = jnp.swapaxes(q, -2, -1)                           # (B, Cq, N)
    kT = jnp.swapaxes(k, -2, -1)                           # (B, Ckv, N)
    vT = jnp.swapaxes(v, -2, -1)                           # (B, Ckv, N)
    attn = jax.nn.softmax(qT @ jnp.swapaxes(kT, -2, -1), axis=-1)   # (B, Cq, Ckv)
    out = jnp.swapaxes(attn @ vT, -2, -1)                  # (B, N, Cq)
    return jnp.einsum("bnc,oc->bno", out, wp) + bp


if __name__ == "__main__":
    B, N = 2, 16
    dim_q, dim_kv = 32, 64

    key = jax.random.PRNGKey(0)
    kx, ky, kq, kkv, kp, kb = jax.random.split(key, 6)

    x = jax.random.normal(kx, (B, N, dim_q), dtype=jnp.float32)
    y = jax.random.normal(ky, (B, N, dim_kv), dtype=jnp.float32)

    # nn.Linear weights are (out_features, in_features); deterministic init.
    wq = jax.random.normal(kq, (dim_q, dim_q), dtype=jnp.float32) * 0.05
    wkv = jax.random.normal(kkv, (2 * dim_kv, dim_kv), dtype=jnp.float32) * 0.05
    wp = jax.random.normal(kp, (dim_q, dim_q), dtype=jnp.float32) * 0.05
    bp = jax.random.normal(kb, (dim_q,), dtype=jnp.float32) * 0.05

    out = jax.block_until_ready(channel_based_cross_attention(x, y, wq, wkv, wp, bp))
    ref = jax.block_until_ready(_reference(x, y, wq, wkv, wp, bp))

    # Tolerance accounts for bf16 MXU operands + approx softmax reciprocal.
    np.testing.assert_allclose(np.asarray(out), np.asarray(ref),
                               rtol=1e-2, atol=1e-2)
    print("KERNEL_OK")
</pallas_src>

<mosaic_0001>
module attributes {stable_mosaic.version = 11 : i64} {
  func.func @_logits_softmax_kernel(%arg0: i32, %arg1: i32, %arg2: memref<1x16x32xbf16, #tpu.memory_space<vmem>>, %arg3: memref<1x16x64xbf16, #tpu.memory_space<vmem>>, %arg4: memref<32x128xbf16, #tpu.memory_space<vmem>>, %arg5: memref<64x64xbf16, #tpu.memory_space<vmem>>, %arg6: memref<1x128x64xbf16, #tpu.memory_space<vmem>>, %arg7: memref<128x64xf32, #tpu.memory_space<vmem>>) attributes {dimension_semantics = [#tpu.dimension_semantics<parallel>, #tpu.dimension_semantics<arbitrary>], iteration_bounds = array<i64: 2, 1>, scalar_prefetch = 0 : i64, scratch_operands = 1 : i64, tpu.core_type = #tpu.core_type<tc>, window_params = [{transform_indices = @transform_0, window_bounds = array<i64: 1, 16, 32>}, {transform_indices = @transform_1, window_bounds = array<i64: 1, 16, 64>}, {pipeline_mode = #tpu.pipeline_mode<synchronous>, transform_indices = @transform_2, window_bounds = array<i64: 32, 128>}, {pipeline_mode = #tpu.pipeline_mode<synchronous>, transform_indices = @transform_3, window_bounds = array<i64: 64, 64>}, {transform_indices = @transform_4, window_bounds = array<i64: 1, 128, 64>}]} {
    %c0_i32 = arith.constant 0 : i32
    %0 = arith.cmpi eq, %arg1, %c0_i32 : i32
    %1 = arith.extui %0 : i1 to i32
    %c0_i32_0 = arith.constant 0 : i32
    %2 = arith.cmpi ne, %1, %c0_i32_0 : i32
    scf.if %2 {
      %cst_18 = arith.constant 0.000000e+00 : f32
      %20 = vector.broadcast %cst_18 : f32 to vector<128x64xf32>
      %c0_19 = arith.constant 0 : index
      %c0_20 = arith.constant 0 : index
      %21 = vector.load %arg7[%c0_19, %c0_20] : memref<128x64xf32, #tpu.memory_space<vmem>>, vector<128x64xf32>
      tpu.vector_store %arg7[%c0_19, %c0_20], %20 {strides = array<i32>} : memref<128x64xf32, #tpu.memory_space<vmem>>, vector<128x64xf32>,
    } else {
    }
    %c0 = arith.constant 0 : index
    %c0_1 = arith.constant 0 : index
    %c0_2 = arith.constant 0 : index
    %3 = vector.load %arg2[%c0, %c0_1, %c0_2] : memref<1x16x32xbf16, #tpu.memory_space<vmem>>, vector<1x16x32xbf16>
    %4 = vector.shape_cast %3 : vector<1x16x32xbf16> to vector<16x32xbf16>
    %c0_3 = arith.constant 0 : index
    %c0_4 = arith.constant 0 : index
    %c0_5 = arith.constant 0 : index
    %5 = vector.load %arg3[%c0_3, %c0_4, %c0_5] : memref<1x16x64xbf16, #tpu.memory_space<vmem>>, vector<1x16x64xbf16>
    %6 = vector.shape_cast %5 : vector<1x16x64xbf16> to vector<16x64xbf16>
    %c0_6 = arith.constant 0 : index
    %c0_7 = arith.constant 0 : index
    %7 = vector.load %arg4[%c0_6, %c0_7] : memref<32x128xbf16, #tpu.memory_space<vmem>>, vector<32x128xbf16>
    %cst = arith.constant dense<0.000000e+00> : vector<16x128xf32>
    %8 = tpu.matmul %4, %7, %cst {dimension_numbers = #tpu.dot_dimension_numbers<[1], [0], [0], [1], [0, 0, 1, 1], [], []>} : vector<16x32xbf16>, vector<32x128xbf16>, vector<16x128xf32> -> vector<16x128xf32>
    %c0_8 = arith.constant 0 : index
    %c0_9 = arith.constant 0 : index
    %9 = vector.load %arg5[%c0_8, %c0_9] : memref<64x64xbf16, #tpu.memory_space<vmem>>, vector<64x64xbf16>
    %cst_10 = arith.constant dense<0.000000e+00> : vector<16x64xf32>
    %10 = tpu.matmul %6, %9, %cst_10 {dimension_numbers = #tpu.dot_dimension_numbers<[1], [0], [0], [1], [0, 0, 1, 1], [], []>} : vector<16x64xbf16>, vector<64x64xbf16>, vector<16x64xf32> -> vector<16x64xf32>
    %c0_11 = arith.constant 0 : index
    %c0_12 = arith.constant 0 : index
    %11 = vector.load %arg7[%c0_11, %c0_12] : memref<128x64xf32, #tpu.memory_space<vmem>>, vector<128x64xf32>
    %12 = arith.truncf %8 : vector<16x128xf32> to vector<16x128xbf16>
    %13 = arith.truncf %10 : vector<16x64xf32> to vector<16x64xbf16>
    %cst_13 = arith.constant dense<0.000000e+00> : vector<128x64xf32>
    %14 = tpu.matmul %12, %13, %cst_13 {dimension_numbers = #tpu.dot_dimension_numbers<[0], [0], [1], [1], [0, 1, 1, 1], [], []>} : vector<16x128xbf16>, vector<16x64xbf16>, vector<128x64xf32> -> vector<128x64xf32>
    %15 = arith.addf %11, %14 : vector<128x64xf32>
    %c0_14 = arith.constant 0 : index
    %c0_15 = arith.constant 0 : index
    %16 = vector.load %arg7[%c0_14, %c0_15] : memref<128x64xf32, #tpu.memory_space<vmem>>, vector<128x64xf32>
    tpu.vector_store %arg7[%c0_14, %c0_15], %15 {strides = array<i32>} : memref<128x64xf32, #tpu.memory_space<vmem>>, vector<128x64xf32>,
    %c0_i32_16 = arith.constant 0 : i32
    %17 = arith.cmpi eq, %arg1, %c0_i32_16 : i32
    %18 = arith.extui %17 : i1 to i32
    %c0_i32_17 = arith.constant 0 : i32
    %19 = arith.cmpi ne, %18, %c0_i32_17 : i32
    scf.if %19 {
      %c0_18 = arith.constant 0 : index
      %c0_19 = arith.constant 0 : index
      %20 = vector.load %arg7[%c0_18, %c0_19] : memref<128x64xf32, #tpu.memory_space<vmem>>, vector<128x64xf32>
      %cst_20 = arith.constant 0.176776692 : f32
      %21 = vector.broadcast %cst_20 : f32 to vector<128x64xf32>
      %22 = arith.mulf %20, %21 : vector<128x64xf32>
      %cst_21 = arith.constant dense<0xFF800000> : vector<128xf32>
      %23 = vector.multi_reduction <maximumf>, %22, %cst_21 [1] : vector<128x64xf32> to vector<128xf32>
      %24 = vector.shape_cast %23 : vector<128xf32> to vector<128x1xf32>
      %25 = vector.broadcast %24 : vector<128x1xf32> to vector<128x64xf32>
      %26 = arith.subf %22, %25 : vector<128x64xf32>
      %27 = math.exp %26 : vector<128x64xf32>
      %cst_22 = arith.constant dense<0.000000e+00> : vector<128xf32>
      %28 = vector.multi_reduction <add>, %27, %cst_22 [1] : vector<128x64xf32> to vector<128xf32>
      %29 = vector.shape_cast %28 : vector<128xf32> to vector<128x1xf32>
      %30 = tpu.reciprocal %29 {approx = true} : vector<128x1xf32> -> vector<128x1xf32>
      %31 = vector.broadcast %30 : vector<128x1xf32> to vector<128x64xf32>
      %32 = arith.mulf %27, %31 : vector<128x64xf32>
      %33 = arith.truncf %32 : vector<128x64xf32> to vector<128x64xbf16>
      %c0_23 = arith.constant 0 : index
      %c0_24 = arith.constant 0 : index
      %c0_25 = arith.constant 0 : index
      %34 = vector.load %arg6[%c0_23, %c0_24, %c0_25] : memref<1x128x64xbf16, #tpu.memory_space<vmem>>, vector<1x128x64xbf16>
      %35 = vector.shape_cast %34 : vector<1x128x64xbf16> to vector<128x64xbf16>
      %36 = vector.shape_cast %33 : vector<128x64xbf16> to vector<1x128x64xbf16>
      tpu.vector_store %arg6[%c0_23, %c0_24, %c0_25], %36 {strides = array<i32>} : memref<1x128x64xbf16, #tpu.memory_space<vmem>>, vector<1x128x64xbf16>,
    } else {
    }
    return
  }
  func.func @transform_0(%arg0: i32, %arg1: i32) -> (i32, i32, i32) {
    %c0_i32 = arith.constant 0 : i32
    %c0_i32_0 = arith.constant 0 : i32
    return %arg0, %arg1, %c0_i32 : i32, i32, i32
  }
  func.func @transform_1(%arg0: i32, %arg1: i32) -> (i32, i32, i32) {
    %c0_i32 = arith.constant 0 : i32
    %c0_i32_0 = arith.constant 0 : i32
    return %arg0, %arg1, %c0_i32 : i32, i32, i32
  }
  func.func @transform_2(%arg0: i32, %arg1: i32) -> (i32, i32) {
    %c0_i32 = arith.constant 0 : i32
    %c0_i32_0 = arith.constant 0 : i32
    %c0_i32_1 = arith.constant 0 : i32
    return %c0_i32, %c0_i32_0 : i32, i32
  }
  func.func @transform_3(%arg0: i32, %arg1: i32) -> (i32, i32) {
    %c0_i32 = arith.constant 0 : i32
    %c0_i32_0 = arith.constant 0 : i32
    %c0_i32_1 = arith.constant 0 : i32
    return %c0_i32, %c0_i32_0 : i32, i32
  }
  func.func @transform_4(%arg0: i32, %arg1: i32) -> (i32, i32, i32) {
    %c0_i32 = arith.constant 0 : i32
    %c0_i32_0 = arith.constant 0 : i32
    %c0_i32_1 = arith.constant 0 : i32
    return %arg0, %c0_i32, %c0_i32_0 : i32, i32, i32
  }
}

module attributes {stable_mosaic.version = 11 : i64} {
  func.func @_logits_softmax_kernel(%arg0: i32, %arg1: i32, %arg2: memref<1x16x32xbf16, #tpu.memory_space<vmem>>, %arg3: memref<1x16x64xbf16, #tpu.memory_space<vmem>>, %arg4: memref<32x128xbf16, #tpu.memory_space<vmem>>, %arg5: memref<64x64xbf16, #tpu.memory_space<vmem>>, %arg6: memref<1x128x64xbf16, #tpu.memory_space<vmem>>, %arg7: memref<128x64xf32, #tpu.memory_space<vmem>>) attributes {dimension_semantics = [#tpu.dimension_semantics<parallel>, #tpu.dimension_semantics<arbitrary>], iteration_bounds = array<i64: 2, 1>, scalar_prefetch = 0 : i64, scratch_operands = 1 : i64, tpu.core_type = #tpu.core_type<tc>, window_params = [{transform_indices = @transform_0, window_bounds = array<i64: 1, 16, 32>}, {transform_indices = @transform_1, window_bounds = array<i64: 1, 16, 64>}, {pipeline_mode = #tpu.pipeline_mode<synchronous>, transform_indices = @transform_2, window_bounds = array<i64: 32, 128>}, {pipeline_mode = #tpu.pipeline_mode<synchronous>, transform_indices = @transform_3, window_bounds = array<i64: 64, 64>}, {transform_indices = @transform_4, window_bounds = array<i64: 1, 128, 64>}]} {
    %c0_i32 = arith.constant 0 : i32
    %0 = arith.cmpi eq, %arg1, %c0_i32 : i32
    %1 = arith.extui %0 : i1 to i32
    %c0_i32_0 = arith.constant 0 : i32
    %2 = arith.cmpi ne, %1, %c0_i32_0 : i32
    scf.if %2 {
      %cst_18 = arith.constant 0.000000e+00 : f32
      %20 = vector.broadcast %cst_18 : f32 to vector<128x64xf32>
      %c0_19 = arith.constant 0 : index
      %c0_20 = arith.constant 0 : index
      %21 = vector.load %arg7[%c0_19, %c0_20] : memref<128x64xf32, #tpu.memory_space<vmem>>, vector<128x64xf32>
      tpu.vector_store %arg7[%c0_19, %c0_20], %20 {strides = array<i32>} : memref<128x64xf32, #tpu.memory_space<vmem>>, vector<128x64xf32>,
    } else {
    }
    %c0 = arith.constant 0 : index
    %c0_1 = arith.constant 0 : index
    %c0_2 = arith.constant 0 : index
    %3 = vector.load %arg2[%c0, %c0_1, %c0_2] : memref<1x16x32xbf16, #tpu.memory_space<vmem>>, vector<1x16x32xbf16>
    %4 = vector.shape_cast %3 : vector<1x16x32xbf16> to vector<16x32xbf16>
    %c0_3 = arith.constant 0 : index
    %c0_4 = arith.constant 0 : index
    %c0_5 = arith.constant 0 : index
    %5 = vector.load %arg3[%c0_3, %c0_4, %c0_5] : memref<1x16x64xbf16, #tpu.memory_space<vmem>>, vector<1x16x64xbf16>
    %6 = vector.shape_cast %5 : vector<1x16x64xbf16> to vector<16x64xbf16>
    %c0_6 = arith.constant 0 : index
    %c0_7 = arith.constant 0 : index
    %7 = vector.load %arg4[%c0_6, %c0_7] : memref<32x128xbf16, #tpu.memory_space<vmem>>, vector<32x128xbf16>
    %cst = arith.constant dense<0.000000e+00> : vector<16x128xf32>
    %8 = tpu.matmul %4, %7, %cst {dimension_numbers = #tpu.dot_dimension_numbers<[1], [0], [0], [1], [0, 0, 1, 1], [], []>} : vector<16x32xbf16>, vector<32x128xbf16>, vector<16x128xf32> -> vector<16x128xf32>
    %c0_8 = arith.constant 0 : index
    %c0_9 = arith.constant 0 : index
    %9 = vector.load %arg5[%c0_8, %c0_9] : memref<64x64xbf16, #tpu.memory_space<vmem>>, vector<64x64xbf16>
    %cst_10 = arith.constant dense<0.000000e+00> : vector<16x64xf32>
    %10 = tpu.matmul %6, %9, %cst_10 {dimension_numbers = #tpu.dot_dimension_numbers<[1], [0], [0], [1], [0, 0, 1, 1], [], []>} : vector<16x64xbf16>, vector<64x64xbf16>, vector<16x64xf32> -> vector<16x64xf32>
    %c0_11 = arith.constant 0 : index
    %c0_12 = arith.constant 0 : index
    %11 = vector.load %arg7[%c0_11, %c0_12] : memref<128x64xf32, #tpu.memory_space<vmem>>, vector<128x64xf32>
    %12 = arith.truncf %8 : vector<16x128xf32> to vector<16x128xbf16>
    %13 = arith.truncf %10 : vector<16x64xf32> to vector<16x64xbf16>
    %cst_13 = arith.constant dense<0.000000e+00> : vector<128x64xf32>
    %14 = tpu.matmul %12, %13, %cst_13 {dimension_numbers = #tpu.dot_dimension_numbers<[0], [0], [1], [1], [0, 1, 1, 1], [], []>} : vector<16x128xbf16>, vector<16x64xbf16>, vector<128x64xf32> -> vector<128x64xf32>
    %15 = arith.addf %11, %14 : vector<128x64xf32>
    %c0_14 = arith.constant 0 : index
    %c0_15 = arith.constant 0 : index
    %16 = vector.load %arg7[%c0_14, %c0_15] : memref<128x64xf32, #tpu.memory_space<vmem>>, vector<128x64xf32>
    tpu.vector_store %arg7[%c0_14, %c0_15], %15 {strides = array<i32>} : memref<128x64xf32, #tpu.memory_space<vmem>>, vector<128x64xf32>,
    %c0_i32_16 = arith.constant 0 : i32
    %17 = arith.cmpi eq, %arg1, %c0_i32_16 : i32
    %18 = arith.extui %17 : i1 to i32
    %c0_i32_17 = arith.constant 0 : i32
    %19 = arith.cmpi ne, %18, %c0_i32_17 : i32
    scf.if %19 {
      %c0_18 = arith.constant 0 : index
      %c0_19 = arith.constant 0 : index
      %20 = vector.load %arg7[%c0_18, %c0_19] : memref<128x64xf32, #tpu.memory_space<vmem>>, vector<128x64xf32>
      %cst_20 = arith.constant 0.176776692 : f32
      %21 = vector.broadcast %cst_20 : f32 to vector<128x64xf32>
      %22 = arith.mulf %20, %21 : vector<128x64xf32>
      %cst_21 = arith.constant dense<0xFF800000> : vector<128xf32>
      %23 = vector.multi_reduction <maximumf>, %22, %cst_21 [1] : vector<128x64xf32> to vector<128xf32>
      %24 = vector.shape_cast %23 : vector<128xf32> to vector<128x1xf32>
      %25 = vector.broadcast %24 : vector<128x1xf32> to vector<128x64xf32>
      %26 = arith.subf %22, %25 : vector<128x64xf32>
      %27 = math.exp %26 : vector<128x64xf32>
      %cst_22 = arith.constant dense<0.000000e+00> : vector<128xf32>
      %28 = vector.multi_reduction <add>, %27, %cst_22 [1] : vector<128x64xf32> to vector<128xf32>
      %29 = vector.shape_cast %28 : vector<128xf32> to vector<128x1xf32>
      %30 = tpu.reciprocal %29 {approx = true} : vector<128x1xf32> -> vector<128x1xf32>
      %31 = vector.broadcast %30 : vector<128x1xf32> to vector<128x64xf32>
      %32 = arith.mulf %27, %31 : vector<128x64xf32>
      %33 = arith.truncf %32 : vector<128x64xf32> to vector<128x64xbf16>
      %c0_23 = arith.constant 0 : index
      %c0_24 = arith.constant 0 : index
      %c0_25 = arith.constant 0 : index
      %34 = vector.load %arg6[%c0_23, %c0_24, %c0_25] : memref<1x128x64xbf16, #tpu.memory_space<vmem>>, vector<1x128x64xbf16>
      %35 = vector.shape_cast %34 : vector<1x128x64xbf16> to vector<128x64xbf16>
      %36 = vector.shape_cast %33 : vector<128x64xbf16> to vector<1x128x64xbf16>
      tpu.vector_store %arg6[%c0_23, %c0_24, %c0_25], %36 {strides = array<i32>} : memref<1x128x64xbf16, #tpu.memory_space<vmem>>, vector<1x128x64xbf16>,
    } else {
    }
    return
  }
  func.func @transform_0(%arg0: i32, %arg1: i32) -> (i32, i32, i32) {
    %c0_i32 = arith.constant 0 : i32
    %c0_i32_0 = arith.constant 0 : i32
    return %arg0, %arg1, %c0_i32 : i32, i32, i32
  }
  func.func @transform_1(%arg0: i32, %arg1: i32) -> (i32, i32, i32) {
    %c0_i32 = arith.constant 0 : i32
    %c0_i32_0 = arith.constant 0 : i32
    return %arg0, %arg1, %c0_i32 : i32, i32, i32
  }
  func.func @transform_2(%arg0: i32, %arg1: i32) -> (i32, i32) {
    %c0_i32 = arith.constant 0 : i32
    %c0_i32_0 = arith.constant 0 : i32
    %c0_i32_1 = arith.constant 0 : i32
    return %c0_i32, %c0_i32_0 : i32, i32
  }
  func.func @transform_3(%arg0: i32, %arg1: i32) -> (i32, i32) {
    %c0_i32 = arith.constant 0 : i32
    %c0_i32_0 = arith.constant 0 : i32
    %c0_i32_1 = arith.constant 0 : i32
    return %c0_i32, %c0_i32_0 : i32, i32
  }
  func.func @transform_4(%arg0: i32, %arg1: i32) -> (i32, i32, i32) {
    %c0_i32 = arith.constant 0 : i32
    %c0_i32_0 = arith.constant 0 : i32
    %c0_i32_1 = arith.constant 0 : i32
    return %arg0, %c0_i32, %c0_i32_0 : i32, i32, i32
  }
}

</mosaic_0001>

<bundles_post_ra>
// kernel: tpu_custom_call.1
= control target key start
LH: loop header
LB: loop body
LE: loop exit
PB: predicated region body
PF: predicated region fallthrough
CT: control target
= control target key end

     0   :  { %s1762_s0 = inlined_call_operand.hbm [shape: bf16[2,16,32], index: 0, kind: input, shape index: {}]   ;;  %s1763_s1 = inlined_call_operand.hbm [shape: bf16[2,16,64], index: 1, kind: input, shape index: {}]   ;;  %s1764_s2 = inlined_call_operand.hbm [shape: bf16[32,128], index: 2, kind: input, shape index: {}]   ;;  %s1765_s3 = inlined_call_operand.hbm [shape: bf16[64,64], index: 3, kind: input, shape index: {}]   ;;  %s1766_s4 = inlined_call_operand.vmem [shape: bf16[2,128,64], index: 4, kind: output, shape index: {}]  }
   0x1   :  { %1770 = sst [smem:[#allocation14_spill]] %s1764_s2 }
   0x2   :  { %9 = vsyncpa [#allocation4], 0 }
   0x3   :  { %11 = vsyncpa [#allocation4 + $0x1], 0 }
   0x4   :  { %12 = vsyncpa [#allocation6], 0 }
   0x5   :  { %14 = vsyncpa [#allocation6 + $0x1], 0 }
   0x6   :  { %15 = vsyncpa [#allocation9], 0  ;;  %s1383_s15 = smov 0   ;;  %s1385_s16 = smov 0  }
   0x7   :  { %s1387_s17 = smov 0   ;;  %s1389_s18 = smov 0  }
   0x8   :  { %s1391_s19 = smov 0   ;;  %s1393_s20 = smov 0  }
   0x9 LB: > { %s1767_s21 = sadd.s32 4294967295, %s1351_s20   ;;  %p55_p0 = scmp.ne.s32.totalorder %s1335_s16, %s1331_s15  ;;  %s1351_s20 = sphi %s1393_s20, %s21_s20   ;;  %s1347_s19 = sphi %s1391_s19, %s1782_s19   ;;  %s1343_s18 = sphi %s1389_s18, %s1781_s18   ;;  %s1339_s17 = sphi %s1387_s17, %s1780_s17   ;;  %s1335_s16 = sphi %s1385_s16, %s1779_s16   ;;  %s1331_s15 = sphi %s1383_s15, %s1778_s15  }
   0xa   : > { %p1415_p1 = scmp.eq.s32.totalorder %s1767_s21, 0  ;;  %p946_p2 = scmp.ge.s32.totalorder %s1351_s20, 1 }
   0xb   : > { %p162_p3 = scmp.lt.s32.totalorder %s1351_s20, 3  ;;  %s1773_s2 = sld [smem:[#allocation14_spill]] }
   0xc   : > { %p1423_p4 = por %p1415_p1, %p55_p0  ;;  %s1353_s28 = smov [#allocation7]  }
   0xd   : > { %p1430_p5 = pnand %p946_p2, %p162_p3  ;;  %s175_s29 = sshll.u32 %s1353_s28, 4  ;;  %s176_s29 = int_to_ptr.vmem [resolvable:$true] %s175_s29 }
   0xe   : > { %s187_s6 = sshll.u32 %s1765_s3, 4  ;;  %s1768_s7 = smov 64   ;;  %s188_s6 = int_to_ptr.hbm [resolvable:$true] %s187_s6 }
   0xf   : > { %p1032_p6 = pneg %p1430_p5  ;;  %s1355_s8 = smov 4  }
  0x10   : > { %s1356_s9 = smov [#allocation8]   ;;  %s33_s11 = sadd.s32 1, %s1347_s19 }
  0x11   : > { %s173_s26 = sshll.u32 %s1773_s2, 4  ;;  %p1033_p7 = pnand %p1032_p6, %p1415_p1  ;;  %s174_s26 = int_to_ptr.hbm [resolvable:$true] %s173_s26 }
  0x12   : > { %s189_s10 = sshll.u32 %s1356_s9, 4  ;;  %s42_s12 = sadd.s32 1, %s1339_s17  ;;  %s190_s10 = int_to_ptr.vmem [resolvable:$true] %s189_s10 }
  0x13   : > { %1035 = dma.hbm_to_vmem [thread:$0]  (!%p1033_p7), %s174_s26, 256, %s176_s29, [#allocation6], %s1768_s7, %s1768_s7, %s1355_s8  }
  0x14   : > { %1038 = dma.hbm_to_vmem [thread:$0]  (!%p1033_p7), %s188_s6, 512, %s190_s10, [#allocation9], %s1768_s7, %s1768_s7, %s1355_s8  }
  0x15   : > { %p35_p8 = scmp.ge.s32.totalorder %s33_s11, 2  ;;  %p49_p9 = scmp.ne.s32.totalorder %s1339_s17, %s1335_s16 }
  0x16   : > { %p50_p10 = scmp.eq.s32.totalorder %s1351_s20, 0  ;;  %p1048_p11 = scmp.lt.s32.totalorder %s1351_s20, 2 }
  0x17   : > { %s1784_s11 = smov (%p35_p8, %s33_s11), 0  ;;  %s203_s14 = sand.u32 1, %s1339_s17  }
  0x18   : > { %p1455_p12 = por %p50_p10, %p49_p9  ;;  %s37_s15 = ssub.s32 %s1347_s19, %s1784_s11 }
  0x19   : > { %p40_p13 = scmp.eq.s32.totalorder %s37_s15, 0  ;;  %s950_s24 = sshll.u32 %s203_s14, 3 }
  0x1a   : > { %s1007_s25 = sshll.u32 %s1347_s19, 3  ;;  %s207_s5 = scalar_lea.vmem [#allocation3], %s950_s24 }
  0x1b   : > { %s1464_s26 = scalar_select %p40_p13, %s1339_s17, %s42_s12  }
  0x1c   : > { %s214_s30 = scalar_lea.hbm %s1762_s0, %s1007_s25  ;;  %s217_s6 = sshll.u32 %s207_s5, 4  ;;  %s218_s6 = int_to_ptr.vmem [resolvable:$true] %s217_s6 }
  0x1d   : > { %s215_s9 = sshll.u32 %s214_s30, 4  ;;  %p1040_p0 = pnand %p1048_p11, %p1455_p12  ;;  %s216_s9 = int_to_ptr.hbm [resolvable:$true] %s215_s9 }
  0x1e   : > { %s238_s15 = scalar_lea.hbm %s1763_s1, %s1007_s25  ;;  %s204_s12 = scalar_lea.sflag [#allocation4], %s203_s14 }
  0x1f   : > { %s239_s7 = sshll.u32 %s238_s15, 4  ;;  %s1776_s2 = smov 64   ;;  %s240_s7 = int_to_ptr.hbm [resolvable:$true] %s239_s7 }
  0x20   : > { %1042 = dma.hbm_to_vmem [thread:$0]  (!%p1040_p0), %s216_s9, 128, %s218_s6, %s204_s12, %s1776_s2, %s1776_s2, %s1355_s8  }
  0x21   : > { %s231_s28 = scalar_lea.vmem [#allocation5], %s950_s24  ;;  %s227_s30 = sand.u32 1, %s1351_s20  }
  0x22   : > { %s241_s29 = sshll.u32 %s231_s28, 4  ;;  %s228_s5 = scalar_lea.sflag [#allocation6], %s227_s30  ;;  %s242_s29 = int_to_ptr.vmem [resolvable:$true] %s241_s29 }
  0x23   : > { %1045 = dma.hbm_to_vmem [thread:$0]  (!%p1040_p0), %s240_s7, 128, %s242_s29, %s228_s5, %s1776_s2, %s1776_s2, %s1355_s8  }
  0x24   : > { %253 = sbr.rel (%p1430_p5) target bundleno = 888 (0x378), region = 36  ;;  %s255_s21 = sand.u32 (!%p1430_p5), 1, %s1335_s16  }
  0x25   : > { %s957_s13 = sshll.u32 (!%p1430_p5), %s255_s21, 3  ;;  %s256_s14 = scalar_lea.sflag (!%p1430_p5), [#allocation4], %s255_s21 }
  0x26   : > { %s259_s25 = scalar_lea.vmem (!%p1430_p5), [#allocation3], %s957_s13 }
  0x29   : > { %1314 = dma.done.wait (%p1423_p4), %s256_s14, 128  }
  0x2a   : > { %1316 = vsyncadd (%p1423_p4), %s256_s14, 4294967168  ;;  %s1777_s24 = sadd.s32 4294967295, %s1351_s20   ;;  %s269_s2 = scalar_lea.vmem [#allocation5], %s957_s13 }
  0x2b   : > { %s265_s6 = sand.u32 1, %s1777_s24  }
  0x2c   : > { %s266_s9 = scalar_lea.sflag [#allocation6], %s265_s6 }
  0x2d   : > { %1318 = dma.done.wait (%p1423_p4), %s266_s9, 128  }
  0x2e   : > { %1320 = vsyncadd (%p1423_p4), %s266_s9, 4294967168 }
  0x2f   : > { %1322 = dma.done.wait (%p1415_p1), [#allocation6], 256  }
  0x30   : > { %1324 = vsyncadd (%p1415_p1), [#allocation6], 4294967040 }
  0x31   : > { %1326 = dma.done.wait (%p1415_p1), [#allocation9], 512  }
  0x32   : > { %1328 = vsyncadd (%p1415_p1), [#allocation9], 4294966784  ;;  %v1013_v0 = vld [vmem:[#allocation7 + $0x8] sm:$0xff]  ;;  %v1012_v1 = vld [vmem:[#allocation7] sm:$0xff]  ;;  %vm364_vm0 = vcmask 261120   ;;  %vm322_vm1 = vcmask 523264  }
  0x33   : > { %374 = vmatpush.bf16.msra.mxu1 %v1013_v0  ;;  %v1010_v2 = vld [vmem:[%s259_s25] sm:$0xff]  ;;  %v1015_v5 = vld [vmem:[#allocation8 + $0x8] sm:$0xff]  ;;  %v1014_v6 = vld [vmem:[#allocation8] sm:$0xff]  ;;  %vm471_vm2 = vcmask 130048   ;;  %v1357_v20 = vmov 0.0   ;;  %p312_p1 = scmp.lt.s32.totalorder %s1343_s18, 1 }
  0x34   : > { %v1017_v3 = vld [vmem:[#allocation8 + $0x18] sm:$0xff]  ;;  %v1016_v4 = vld [vmem:[#allocation8 + $0x10] sm:$0xff]  ;;  %v1011_v7 = vld [vmem:[%s269_s2] sm:$0xff]  ;;  %323 = vst.msk [vmem:[#allocation2] sm:$0xff] %vm322_vm1, %v1357_v20  ;;  %vm804_vm3 = vcmask 519168  }
  0x35   : > { %324 = vst.msk [vmem:[#allocation2 + $0x8] sm:$0xff] %vm322_vm1, %v1357_v20  ;;  %s1786_s18 = smov (!%p312_p1, %s1343_s18), 1 }
  0x36   : > { %325 = vst.msk [vmem:[#allocation2 + $0x10] sm:$0xff] %vm322_vm1, %v1357_v20  ;;  %s1009_s22 = sshll.u32 %s1786_s18, 6 }
  0x37   : > { %375 = vmatpush.bf16.msra.mxu1 %v1012_v1  ;;  %326 = vst.msk [vmem:[#allocation2 + $0x18] sm:$0xff] %vm322_vm1, %v1357_v20  ;;  %s1693_s7 = scalar_lea.vmem %s1766_s4, %s1009_s22 }
  0x38   : > { %327 = vst.msk [vmem:[#allocation2 + $0x20] sm:$0xff] %vm322_vm1, %v1357_v20 }
  0x39   : > { %328 = vst.msk [vmem:[#allocation2 + $0x28] sm:$0xff] %vm322_vm1, %v1357_v20 }
  0x3a   : > { %975 = vmatmul.msk.bf16.vlgmr.msra.gmra.mxu1 %vm364_vm0, %v1010_v2  ;;  %329 = vst.msk [vmem:[#allocation2 + $0x30] sm:$0xff] %vm322_vm1, %v1357_v20 }
  0x3b   : > { %427 = vmatpush.bf16.msrb.mxu1 %v1017_v3  ;;  %330 = vst.msk [vmem:[#allocation2 + $0x38] sm:$0xff] %vm322_vm1, %v1357_v20  ;;  %v437_v23 = vld [vmem:[#allocation2] sm:$0xff] }
  0x3c   : > { %331 = vst.msk [vmem:[#allocation2 + $0x40] sm:$0xff] %vm322_vm1, %v1357_v20  ;;  %v438_v26 = vld [vmem:[#allocation2 + $0x8] sm:$0xff] }
  0x3d   : > { %332 = vst.msk [vmem:[#allocation2 + $0x48] sm:$0xff] %vm322_vm1, %v1357_v20  ;;  %v439_v32 = vld [vmem:[#allocation2 + $0x10] sm:$0xff] }
  0x3e   : > { %333 = vst.msk [vmem:[#allocation2 + $0x50] sm:$0xff] %vm322_vm1, %v1357_v20  ;;  %v440_v38 = vld [vmem:[#allocation2 + $0x18] sm:$0xff] }
  0x3f   : > { %428 = vmatpush.bf16.msrb.mxu1 %v1016_v4  ;;  %334 = vst.msk [vmem:[#allocation2 + $0x58] sm:$0xff] %vm322_vm1, %v1357_v20  ;;  %v441_v46 = vld [vmem:[#allocation2 + $0x20] sm:$0xff] }
  0x40   : > { %335 = vst.msk [vmem:[#allocation2 + $0x60] sm:$0xff] %vm322_vm1, %v1357_v20  ;;  %v442_v50 = vld [vmem:[#allocation2 + $0x28] sm:$0xff] }
  0x41   : > { %336 = vst.msk [vmem:[#allocation2 + $0x68] sm:$0xff] %vm322_vm1, %v1357_v20  ;;  %v443_v56 = vld [vmem:[#allocation2 + $0x30] sm:$0xff] }
  0x42   : > { %337 = vst.msk [vmem:[#allocation2 + $0x70] sm:$0xff] %vm322_vm1, %v1357_v20  ;;  %v444_v62 = vld [vmem:[#allocation2 + $0x38] sm:$0xff] }
  0x43   : > { %429 = vmatpush.bf16.msrb.mxu1 %v1015_v5  ;;  %338 = vst.msk [vmem:[#allocation2 + $0x78] sm:$0xff] %vm322_vm1, %v1357_v20  ;;  %v445_v4 = vld [vmem:[#allocation2 + $0x40] sm:$0xff] }
  0x47   : > { %430 = vmatpush.bf16.msrb.mxu1 %v1014_v6 }
  0x4a   : > { %996 = vmatmul.msk.bf16.vlgmr.msrb.gmra.mxu1 %vm322_vm1, %v1011_v7 }
  0xb7   : > { %v377_v8 = vpop.f32.mrf.mxu1 }
  0xbf   : > { %v379_v9 = vpop.f32.mrf.mxu1 }
  0xc0   : > { %v453_v10 = vpack.c.bf16 %v379_v9, %v377_v8 }
  0xc2   : > { %455 = vxpose.xlu0.c.b16.start.end [1/1] (short) %v453_v10, 128  ;;  %v446_v10 = vld [vmem:[#allocation2 + $0x48] sm:$0xff] }
  0xc7   : > { %v432_v11 = vpop.f32.mrf.mxu1 }
  0xcf   : > { %v434_v12 = vpop.f32.mrf.mxu1 }
  0xd0   : > { %v454_v13 = vpack.c.bf16 %v434_v12, %v432_v11 }
  0xd2   : > { %503 = vmatpush.bf16.msra.mxu0 %v454_v13  ;;  %1018 = vmatpush.bf16.msra.mxu2 %v454_v13 }
  0xd3   : > { %1019 = vmatpush.bf16.msra.mxu3 %v454_v13 }
 0x16e   : > { %v463_v14 = vpop.trf.xlu0 }
 0x16f   : > { %997 = vmatmul.msk.bf16.vlgmr.msra.gmra.mxu0 %vm471_vm2, %v463_v14 }
 0x17e   : > { %v464_v15 = vpop.trf.xlu0 }
 0x17f   : > { %998 = vmatmul.msk.bf16.gmra.mxu0 %vm471_vm2, %v464_v15 }
 0x18e   : > { %v465_v16 = vpop.trf.xlu0 }
 0x18f   : > { %999 = vmatmul.msk.bf16.vlgmr.msra.gmra.mxu2 %vm471_vm2, %v465_v16  ;;  %v447_v16 = vld [vmem:[#allocation2 + $0x50] sm:$0xff] }
 0x19e   : > { %v466_v17 = vpop.trf.xlu0 }
 0x19f   : > { %1000 = vmatmul.msk.bf16.gmra.mxu2 %vm471_vm2, %v466_v17 }
 0x1ae   : > { %v467_v18 = vpop.trf.xlu0 }
 0x1af   : > { %1001 = vmatmul.msk.bf16.gmra.mxu2 %vm471_vm2, %v467_v18 }
 0x1be   : > { %v468_v19 = vpop.trf.xlu0 }
 0x1bf   : > { %1002 = vmatmul.msk.bf16.vlgmr.msra.gmra.mxu3 %vm471_vm2, %v468_v19 }
 0x1ce   : > { %v469_v21 = vpop.trf.xlu0 }
 0x1cf   : > { %1003 = vmatmul.msk.bf16.gmra.mxu3 %vm471_vm2, %v469_v21 }
 0x1de   : > { %v470_v22 = vpop.trf.xlu0 }
 0x1df   : > { %1004 = vmatmul.msk.bf16.gmra.mxu3 %vm471_vm2, %v470_v22  ;;  %v448_v22 = vld [vmem:[#allocation2 + $0x58] sm:$0xff] }
 0x1ec   : > { %v505_v24 = vpop.f32.mrf.mxu0 }
 0x1ed   : > { %v545_v25 = vadd.f32 %v505_v24, %v437_v23 }
 0x1ef   : > { %561 = vst.msk [vmem:[#allocation2] sm:$0xff] %vm322_vm1, %v545_v25 }
 0x1f4   : > { %v507_v27 = vpop.f32.mrf.mxu0 }
 0x1f5   : > { %v546_v28 = vadd.f32 %v507_v27, %v438_v26 }
 0x1f6   : > { %v580_v29 = vld [vmem:[#allocation2] sm:$0xff] }
 0x1f7   : > { %562 = vst.msk [vmem:[#allocation2 + $0x8] sm:$0xff] %vm322_vm1, %v546_v28  ;;  %v1531_v30 = vmul.f32 0.17677669, %v580_v29  ;;  %v449_v28 = vld [vmem:[#allocation2 + $0x60] sm:$0xff] }
 0x1f9   : > { %v612_v31 = vsel %vm322_vm1, %v1531_v30, -inf }
 0x1fa   : > { %613 = vmax.xlane.f32.xlu0 %v612_v31 }
 0x1fc   : > { %v510_v33 = vpop.f32.mrf.mxu0 }
 0x1fd   : > { %v547_v34 = vadd.f32 %v510_v33, %v439_v32 }
 0x1fe   : > { %v581_v35 = vld [vmem:[#allocation2 + $0x8] sm:$0xff] }
 0x1ff   : > { %563 = vst.msk [vmem:[#allocation2 + $0x10] sm:$0xff] %vm322_vm1, %v547_v34  ;;  %v1536_v36 = vmul.f32 0.17677669, %v581_v35  ;;  %v450_v35 = vld [vmem:[#allocation2 + $0x68] sm:$0xff] }
 0x201   : > { %v615_v37 = vsel %vm322_vm1, %v1536_v36, -inf }
 0x202   : > { %616 = vmax.xlane.f32.xlu1 %v615_v37 }
 0x204   : > { %v512_v39 = vpop.f32.mrf.mxu0 }
 0x205   : > { %v548_v40 = vadd.f32 %v512_v39, %v440_v38 }
 0x206   : > { %v582_v41 = vld [vmem:[#allocation2 + $0x10] sm:$0xff] }
 0x207   : > { %564 = vst.msk [vmem:[#allocation2 + $0x18] sm:$0xff] %vm322_vm1, %v548_v40  ;;  %v1541_v42 = vmul.f32 0.17677669, %v582_v41 }
 0x209   : > { %v618_v43 = vsel %vm322_vm1, %v1541_v42, -inf }
 0x20a   : > { %619 = vmax.xlane.f32.xlu1 %v618_v43  ;;  %v451_v43 = vld [vmem:[#allocation2 + $0x70] sm:$0xff] }
 0x20e   : > { %v583_v44 = vld [vmem:[#allocation2 + $0x18] sm:$0xff] }
 0x20f   : > { %v1545_v45 = vmul.f32 0.17677669, %v583_v44 }
 0x211   : > { %v621_v47 = vsel %vm322_vm1, %v1545_v45, -inf }
 0x212   : > { %v515_v48 = vpop.f32.mrf.mxu2  ;;  %622 = vmax.xlane.f32.xlu2 %v621_v47 }
 0x213   : > { %v549_v49 = vadd.f32 %v515_v48, %v441_v46 }
 0x215   : > { %565 = vst.msk [vmem:[#allocation2 + $0x20] sm:$0xff] %vm322_vm1, %v549_v49 }
 0x21a   : > { %v517_v51 = vpop.f32.mrf.mxu2 }
 0x21b   : > { %v550_v52 = vadd.f32 %v517_v51, %v442_v50  ;;  %v452_v50 = vld [vmem:[#allocation2 + $0x78] sm:$0xff] }
 0x21c   : > { %v584_v53 = vld [vmem:[#allocation2 + $0x20] sm:$0xff] }
 0x21d   : > { %566 = vst.msk [vmem:[#allocation2 + $0x28] sm:$0xff] %vm322_vm1, %v550_v52  ;;  %v1551_v54 = vmul.f32 0.17677669, %v584_v53 }
 0x21f   : > { %v624_v55 = vsel %vm322_vm1, %v1551_v54, -inf }
 0x220   : > { %625 = vmax.xlane.f32.xlu2 %v624_v55 }
 0x222   : > { %v520_v57 = vpop.f32.mrf.mxu2 }
 0x223   : > { %v551_v58 = vadd.f32 %v520_v57, %v443_v56 }
 0x224   : > { %v585_v59 = vld [vmem:[#allocation2 + $0x28] sm:$0xff] }
 0x225   : > { %567 = vst.msk [vmem:[#allocation2 + $0x30] sm:$0xff] %vm322_vm1, %v551_v58  ;;  %v1556_v60 = vmul.f32 0.17677669, %v585_v59 }
 0x227   : > { %v627_v61 = vsel %vm322_vm1, %v1556_v60, -inf }
 0x228   : > { %628 = vmax.xlane.f32.xlu1 %v627_v61 }
 0x22a   : > { %v522_v63 = vpop.f32.mrf.mxu2 }
 0x22b   : > { %v552_v0 = vadd.f32 %v522_v63, %v444_v62 }
 0x22c   : > { %v586_v1 = vld [vmem:[#allocation2 + $0x30] sm:$0xff] }
 0x22d   : > { %568 = vst.msk [vmem:[#allocation2 + $0x38] sm:$0xff] %vm322_vm1, %v552_v0  ;;  %v1561_v2 = vmul.f32 0.17677669, %v586_v1 }
 0x22f   : > { %v630_v3 = vsel %vm322_vm1, %v1561_v2, -inf }
 0x230   : > { %631 = vmax.xlane.f32.xlu2 %v630_v3 }
 0x232   : > { %v525_v5 = vpop.f32.mrf.mxu2 }
 0x233   : > { %v553_v6 = vadd.f32 %v525_v5, %v445_v4 }
 0x234   : > { %v587_v7 = vld [vmem:[#allocation2 + $0x38] sm:$0xff] }
 0x235   : > { %569 = vst.msk [vmem:[#allocation2 + $0x40] sm:$0xff] %vm322_vm1, %v553_v6  ;;  %v1566_v8 = vmul.f32 0.17677669, %v587_v7 }
 0x237   : > { %v633_v9 = vsel %vm322_vm1, %v1566_v8, -inf }
 0x238   : > { %634 = vmax.xlane.f32.xlu1 %v633_v9 }
 0x23a   : > { %v527_v11 = vpop.f32.mrf.mxu2 }
 0x23b   : > { %v554_v12 = vadd.f32 %v527_v11, %v446_v10 }
 0x23c   : > { %v588_v13 = vld [vmem:[#allocation2 + $0x40] sm:$0xff] }
 0x23d   : > { %570 = vst.msk [vmem:[#allocation2 + $0x48] sm:$0xff] %vm322_vm1, %v554_v12  ;;  %v1571_v14 = vmul.f32 0.17677669, %v588_v13 }
 0x23f   : > { %v636_v15 = vsel %vm322_vm1, %v1571_v14, -inf }
 0x240   : > { %637 = vmax.xlane.f32.xlu2 %v636_v15 }
 0x242   : > { %v530_v17 = vpop.f32.mrf.mxu3 }
 0x243   : > { %v555_v18 = vadd.f32 %v530_v17, %v447_v16 }
 0x244   : > { %v589_v19 = vld [vmem:[#allocation2 + $0x48] sm:$0xff] }
 0x245   : > { %571 = vst.msk [vmem:[#allocation2 + $0x50] sm:$0xff] %vm322_vm1, %v555_v18  ;;  %v1576_v20 = vmul.f32 0.17677669, %v589_v19 }
 0x247   : > { %v639_v21 = vsel %vm322_vm1, %v1576_v20, -inf }
 0x248   : > { %640 = vmax.xlane.f32.xlu1 %v639_v21 }
 0x24a   : > { %v532_v23 = vpop.f32.mrf.mxu3 }
 0x24b   : > { %v556_v24 = vadd.f32 %v532_v23, %v448_v22 }
 0x24c   : > { %v590_v25 = vld [vmem:[#allocation2 + $0x50] sm:$0xff] }
 0x24d   : > { %572 = vst.msk [vmem:[#allocation2 + $0x58] sm:$0xff] %vm322_vm1, %v556_v24  ;;  %v1581_v26 = vmul.f32 0.17677669, %v590_v25 }
 0x24f   : > { %v642_v27 = vsel %vm322_vm1, %v1581_v26, -inf }
 0x250   : > { %643 = vmax.xlane.f32.xlu2 %v642_v27 }
 0x252   : > { %v535_v29 = vpop.f32.mrf.mxu3 }
 0x253   : > { %v557_v31 = vadd.f32 %v535_v29, %v449_v28 }
 0x254   : > { %v591_v32 = vld [vmem:[#allocation2 + $0x58] sm:$0xff] }
 0x255   : > { %573 = vst.msk [vmem:[#allocation2 + $0x60] sm:$0xff] %vm322_vm1, %v557_v31  ;;  %v1586_v33 = vmul.f32 0.17677669, %v591_v32 }
 0x257   : > { %v645_v34 = vsel %vm322_vm1, %v1586_v33, -inf }
 0x258   : > { %646 = vmax.xlane.f32.xlu1 %v645_v34 }
 0x25a   : > { %v537_v37 = vpop.f32.mrf.mxu3 }
 0x25b   : > { %v558_v38 = vadd.f32 %v537_v37, %v450_v35 }
 0x25c   : > { %v592_v39 = vld [vmem:[#allocation2 + $0x60] sm:$0xff] }
 0x25d   : > { %574 = vst.msk [vmem:[#allocation2 + $0x68] sm:$0xff] %vm322_vm1, %v558_v38  ;;  %v1591_v40 = vmul.f32 0.17677669, %v592_v39 }
 0x25f   : > { %v648_v41 = vsel %vm322_vm1, %v1591_v40, -inf }
 0x260   : > { %649 = vmax.xlane.f32.xlu2 %v648_v41 }
 0x262   : > { %v540_v44 = vpop.f32.mrf.mxu3 }
 0x263   : > { %v559_v46 = vadd.f32 %v540_v44, %v451_v43 }
 0x264   : > { %v593_v47 = vld [vmem:[#allocation2 + $0x68] sm:$0xff] }
 0x265   : > { %575 = vst.msk [vmem:[#allocation2 + $0x70] sm:$0xff] %vm322_vm1, %v559_v46  ;;  %v1596_v48 = vmul.f32 0.17677669, %v593_v47 }
 0x267   : > { %v651_v49 = vsel %vm322_vm1, %v1596_v48, -inf }
 0x268   : > { %652 = vmax.xlane.f32.xlu1 %v651_v49 }
 0x26a   : > { %v542_v51 = vpop.f32.mrf.mxu3 }
 0x26b   : > { %v560_v52 = vadd.f32 %v542_v51, %v452_v50 }
 0x26c   : > { %v594_v53 = vld [vmem:[#allocation2 + $0x70] sm:$0xff] }
 0x26d   : > { %576 = vst.msk [vmem:[#allocation2 + $0x78] sm:$0xff] %vm322_vm1, %v560_v52  ;;  %v614_v55 = vpop.xlane.xlu0 %613  ;;  %v1601_v56 = vmul.f32 0.17677669, %v594_v53 }
 0x26e   : > { %v660_v57 = vsub.f32 %v1531_v30, %v614_v55 }
 0x26f   : > { %v654_v58 = vsel %vm322_vm1, %v1601_v56, -inf }
 0x270   : > { %v676_v59 = vmul.f32 1.442695, %v660_v57  ;;  %655 = vmax.xlane.f32.xlu2 %v654_v58 }
 0x272   : > { %1105 = vpow2.f32 %v676_v59 }
 0x274   : > { %v595_v61 = vld [vmem:[#allocation2 + $0x78] sm:$0xff] }
 0x275   : > { %v617_v62 = vpop.xlane.xlu1 %616  ;;  %v1606_v63 = vmul.f32 0.17677669, %v595_v61 }
 0x276   : > { %v661_v0 = vsub.f32 %v1536_v36, %v617_v62 }
 0x277   : > { %v657_v1 = vsel %vm322_vm1, %v1606_v63, -inf }
 0x278   : > { %v1611_v3 = vpop.eup %1105  ;;  %v678_v4 = vmul.f32 1.442695, %v661_v0  ;;  %658 = vmax.xlane.f32.xlu1 %v657_v1 }
 0x279   : > { %v708_v30 = vsel %vm322_vm1, %v1611_v3, 0.0 }
 0x27a   : > { %1107 = vpow2.f32 %v678_v4  ;;  %709 = vadd.xlane.f32.xlu2 %v708_v30 }
 0x27d   : > { %v620_v5 = vpop.xlane.xlu1 %619 }
 0x27e   : > { %v662_v6 = vsub.f32 %v1541_v42, %v620_v5 }
 0x280   : > { %v1616_v7 = vpop.eup %1107  ;;  %v680_v9 = vmul.f32 1.442695, %v662_v6 }
 0x281   : > { %v711_v36 = vsel %vm322_vm1, %v1616_v7, 0.0 }
 0x282   : > { %1109 = vpow2.f32 %v680_v9  ;;  %712 = vadd.xlane.f32.xlu1 %v711_v36 }
 0x285   : > { %v623_v10 = vpop.xlane.xlu2 %622 }
 0x286   : > { %v663_v11 = vsub.f32 %v1545_v45, %v623_v10 }
 0x288   : > { %v1621_v12 = vpop.eup %1109  ;;  %v682_v13 = vmul.f32 1.442695, %v663_v11 }
 0x289   : > { %v714_v15 = vsel %vm322_vm1, %v1621_v12, 0.0 }
 0x28a   : > { %1111 = vpow2.f32 %v682_v13  ;;  %715 = vadd.xlane.f32.xlu2 %v714_v15 }
 0x290   : > { %v1625_v42 = vpop.eup %1111 }
 0x291   : > { %v717_v16 = vsel %vm322_vm1, %v1625_v42, 0.0 }
 0x292   : > { %718 = vadd.xlane.f32.xlu1 %v717_v16 }
 0x293   : > { %v626_v17 = vpop.xlane.xlu2 %625 }
 0x294   : > { %v664_v18 = vsub.f32 %v1551_v54, %v626_v17 }
 0x296   : > { %v684_v19 = vmul.f32 1.442695, %v664_v18 }
 0x298   : > { %1113 = vpow2.f32 %v684_v19 }
 0x29b   : > { %v629_v45 = vpop.xlane.xlu1 %628 }
 0x29c   : > { %v665_v21 = vsub.f32 %v1556_v60, %v629_v45 }
 0x29e   : > { %v1631_v22 = vpop.eup %1113  ;;  %v686_v23 = vmul.f32 1.442695, %v665_v21 }
 0x29f   : > { %v720_v24 = vsel %vm322_vm1, %v1631_v22, 0.0 }
 0x2a0   : > { %1115 = vpow2.f32 %v686_v23  ;;  %721 = vadd.xlane.f32.xlu2 %v720_v24 }
 0x2a3   : > { %v632_v25 = vpop.xlane.xlu2 %631 }
 0x2a4   : > { %v666_v27 = vsub.f32 %v1561_v2, %v632_v25 }
 0x2a6   : > { %v1636_v28 = vpop.eup %1115  ;;  %v688_v29 = vmul.f32 1.442695, %v666_v27 }
 0x2a7   : > { %v723_v54 = vsel %vm322_vm1, %v1636_v28, 0.0 }
 0x2a8   : > { %1117 = vpow2.f32 %v688_v29  ;;  %724 = vadd.xlane.f32.xlu1 %v723_v54 }
 0x2ab   : > { %v635_v60 = vpop.xlane.xlu1 %634 }
 0x2ac   : > { %v667_v31 = vsub.f32 %v1566_v8, %v635_v60 }
 0x2ae   : > { %v1641_v32 = vpop.eup %1117  ;;  %v690_v34 = vmul.f32 1.442695, %v667_v31 }
 0x2af   : > { %v726_v35 = vsel %vm322_vm1, %v1641_v32, 0.0 }
 0x2b0   : > { %1119 = vpow2.f32 %v690_v34  ;;  %727 = vadd.xlane.f32.xlu2 %v726_v35 }
 0x2b3   : > { %v638_v2 = vpop.xlane.xlu2 %637 }
 0x2b4   : > { %v668_v37 = vsub.f32 %v1571_v14, %v638_v2 }
 0x2b6   : > { %v1646_v38 = vpop.eup %1119  ;;  %v692_v39 = vmul.f32 1.442695, %v668_v37 }
 0x2b7   : > { %v729_v41 = vsel %vm322_vm1, %v1646_v38, 0.0 }
 0x2b8   : > { %1121 = vpow2.f32 %v692_v39  ;;  %730 = vadd.xlane.f32.xlu1 %v729_v41 }
 0x2bb   : > { %v641_v8 = vpop.xlane.xlu1 %640 }
 0x2bc   : > { %v669_v43 = vsub.f32 %v1576_v20, %v641_v8 }
 0x2be   : > { %v1651_v44 = vpop.eup %1121  ;;  %v694_v46 = vmul.f32 1.442695, %v669_v43 }
 0x2bf   : > { %v732_v47 = vsel %vm322_vm1, %v1651_v44, 0.0 }
 0x2c0   : > { %1123 = vpow2.f32 %v694_v46  ;;  %733 = vadd.xlane.f32.xlu2 %v732_v47 }
 0x2c3   : > { %v644_v14 = vpop.xlane.xlu2 %643 }
 0x2c4   : > { %v670_v49 = vsub.f32 %v1581_v26, %v644_v14 }
 0x2c6   : > { %v1656_v50 = vpop.eup %1123  ;;  %v696_v51 = vmul.f32 1.442695, %v670_v49 }
 0x2c7   : > { %v735_v52 = vsel %vm322_vm1, %v1656_v50, 0.0 }
 0x2c8   : > { %1125 = vpow2.f32 %v696_v51  ;;  %736 = vadd.xlane.f32.xlu1 %v735_v52 }
 0x2cb   : > { %v647_v20 = vpop.xlane.xlu1 %646 }
 0x2cc   : > { %v671_v53 = vsub.f32 %v1586_v33, %v647_v20 }
 0x2ce   : > { %v1661_v55 = vpop.eup %1125  ;;  %v698_v57 = vmul.f32 1.442695, %v671_v53 }
 0x2cf   : > { %v738_v58 = vsel %vm322_vm1, %v1661_v55, 0.0 }
 0x2d0   : > { %1127 = vpow2.f32 %v698_v57  ;;  %739 = vadd.xlane.f32.xlu2 %v738_v58 }
 0x2d3   : > { %v650_v26 = vpop.xlane.xlu2 %649 }
 0x2d4   : > { %v672_v59 = vsub.f32 %v1591_v40, %v650_v26 }
 0x2d6   : > { %v1666_v61 = vpop.eup %1127  ;;  %v700_v62 = vmul.f32 1.442695, %v672_v59 }
 0x2d7   : > { %v741_v0 = vsel %vm322_vm1, %v1666_v61, 0.0 }
 0x2d8   : > { %1129 = vpow2.f32 %v700_v62  ;;  %742 = vadd.xlane.f32.xlu1 %v741_v0 }
 0x2db   : > { %v653_v33 = vpop.xlane.xlu1 %652 }
 0x2dc   : > { %v673_v1 = vsub.f32 %v1596_v48, %v653_v33 }
 0x2de   : > { %v1671_v4 = vpop.eup %1129  ;;  %v702_v30 = vmul.f32 1.442695, %v673_v1 }
 0x2df   : > { %v744_v5 = vsel %vm322_vm1, %v1671_v4, 0.0 }
 0x2e0   : > { %1131 = vpow2.f32 %v702_v30  ;;  %745 = vadd.xlane.f32.xlu2 %v744_v5 }
 0x2e3   : > { %v656_v40 = vpop.xlane.xlu2 %655 }
 0x2e4   : > { %v674_v6 = vsub.f32 %v1601_v56, %v656_v40 }
 0x2e6   : > { %v1676_v9 = vpop.eup %1131  ;;  %v704_v36 = vmul.f32 1.442695, %v674_v6 }
 0x2e7   : > { %v747_v10 = vsel %vm322_vm1, %v1676_v9, 0.0 }
 0x2e8   : > { %1133 = vpow2.f32 %v704_v36  ;;  %748 = vadd.xlane.f32.xlu1 %v747_v10 }
 0x2eb   : > { %v659_v48 = vpop.xlane.xlu1 %658 }
 0x2ec   : > { %v675_v11 = vsub.f32 %v1606_v63, %v659_v48 }
 0x2ed   : > { %v710_v13 = vpop.xlane.xlu2 %709 }
 0x2ee   : > { %v1682_v15 = vpop.eup %1133  ;;  %v706_v16 = vmul.f32 1.442695, %v675_v11  ;;  %1135 = vrcp.f32 %v710_v13 }
 0x2ef   : > { %v750_v56 = vsel %vm322_vm1, %v1682_v15, 0.0 }
 0x2f0   : > { %1137 = vpow2.f32 %v706_v16  ;;  %751 = vadd.xlane.f32.xlu2 %v750_v56 }
 0x2f4   : > { %v1136_v17 = vpop.eup %1135 }
 0x2f5   : > { %v772_v18 = vmul.f32 %v1136_v17, %v1611_v3  ;;  %v713_v19 = vpop.xlane.xlu1 %712 }
 0x2f6   : > { %v1688_v45 = vpop.eup %1137  ;;  %1139 = vrcp.f32 %v713_v19 }
 0x2f7   : > { %v788_v63 = vpack.c.bf16 %v772_v18, %v772_v18  ;;  %v753_v21 = vsel %vm322_vm1, %v1688_v45, 0.0 }
 0x2f8   : > { %754 = vadd.xlane.f32.xlu1 %v753_v21 }
 0x2f9   : > { %805 = vst.msk [vmem:[%s1693_s7] sm:$0xf] %vm804_vm3, %v788_v63 }
 0x2fc   : > { %v1140_v3 = vpop.eup %1139 }
 0x2fd   : > { %v773_v23 = vmul.f32 %v1140_v3, %v1616_v7  ;;  %v716_v24 = vpop.xlane.xlu2 %715 }
 0x2fe   : > { %1141 = vrcp.f32 %v716_v24 }
 0x2ff   : > { %v789_v25 = vpack.c.bf16 %v773_v23, %v773_v23 }
 0x301   : > { %806 = vst.msk [vmem:[%s1693_s7 + $0x4] sm:$0xf] %vm804_vm3, %v789_v25 }
 0x304   : > { %v1142_v27 = vpop.eup %1141 }
 0x305   : > { %v774_v29 = vmul.f32 %v1142_v27, %v1621_v12  ;;  %v719_v54 = vpop.xlane.xlu1 %718 }
 0x306   : > { %1143 = vrcp.f32 %v719_v54 }
 0x307   : > { %v790_v60 = vpack.c.bf16 %v774_v29, %v774_v29 }
 0x309   : > { %807 = vst.msk [vmem:[%s1693_s7 + $0x8] sm:$0xf] %vm804_vm3, %v790_v60 }
 0x30c   : > { %v1144_v31 = vpop.eup %1143 }
 0x30d   : > { %v775_v34 = vmul.f32 %v1144_v31, %v1625_v42 }
 0x30f   : > { %v791_v35 = vpack.c.bf16 %v775_v34, %v775_v34 }
 0x311   : > { %808 = vst.msk [vmem:[%s1693_s7 + $0xc] sm:$0xf] %vm804_vm3, %v791_v35 }
 0x313   : > { %v722_v7 = vpop.xlane.xlu2 %721 }
 0x314   : > { %1145 = vrcp.f32 %v722_v7 }
 0x31a   : > { %v1146_v2 = vpop.eup %1145 }
 0x31b   : > { %v776_v37 = vmul.f32 %v1146_v2, %v1631_v22  ;;  %v725_v12 = vpop.xlane.xlu1 %724 }
 0x31c   : > { %1147 = vrcp.f32 %v725_v12 }
 0x31d   : > { %v792_v39 = vpack.c.bf16 %v776_v37, %v776_v37 }
 0x31f   : > { %809 = vst.msk [vmem:[%s1693_s7 + $0x10] sm:$0xf] %vm804_vm3, %v792_v39 }
 0x322   : > { %v1148_v41 = vpop.eup %1147 }
 0x323   : > { %v777_v8 = vmul.f32 %v1148_v41, %v1636_v28  ;;  %v728_v42 = vpop.xlane.xlu2 %727 }
 0x324   : > { %1149 = vrcp.f32 %v728_v42 }
 0x325   : > { %v793_v43 = vpack.c.bf16 %v777_v8, %v777_v8 }
 0x327   : > { %810 = vst.msk [vmem:[%s1693_s7 + $0x14] sm:$0xf] %vm804_vm3, %v793_v43 }
 0x32a   : > { %v1150_v46 = vpop.eup %1149 }
 0x32b   : > { %v778_v47 = vmul.f32 %v1150_v46, %v1641_v32  ;;  %v731_v22 = vpop.xlane.xlu1 %730 }
 0x32c   : > { %1151 = vrcp.f32 %v731_v22 }
 0x32d   : > { %v794_v14 = vpack.c.bf16 %v778_v47, %v778_v47 }
 0x32f   : > { %811 = vst.msk [vmem:[%s1693_s7 + $0x18] sm:$0xf] %vm804_vm3, %v794_v14 }
 0x332   : > { %v1152_v49 = vpop.eup %1151 }
 0x333   : > { %v779_v51 = vmul.f32 %v1152_v49, %v1646_v38  ;;  %v734_v28 = vpop.xlane.xlu2 %733 }
 0x334   : > { %1153 = vrcp.f32 %v734_v28 }
 0x335   : > { %v795_v52 = vpack.c.bf16 %v779_v51, %v779_v51 }
 0x337   : > { %812 = vst.msk [vmem:[%s1693_s7 + $0x1c] sm:$0xf] %vm804_vm3, %v795_v52 }
 0x33a   : > { %v1154_v20 = vpop.eup %1153 }
 0x33b   : > { %v780_v53 = vmul.f32 %v1154_v20, %v1651_v44  ;;  %v737_v32 = vpop.xlane.xlu1 %736 }
 0x33c   : > { %1155 = vrcp.f32 %v737_v32 }
 0x33d   : > { %v796_v57 = vpack.c.bf16 %v780_v53, %v780_v53 }
 0x33f   : > { %813 = vst.msk [vmem:[%s1693_s7 + $0x20] sm:$0xf] %vm804_vm3, %v796_v57 }
 0x342   : > { %v1156_v58 = vpop.eup %1155 }
 0x343   : > { %v781_v26 = vmul.f32 %v1156_v58, %v1656_v50  ;;  %v740_v38 = vpop.xlane.xlu2 %739 }
 0x344   : > { %1157 = vrcp.f32 %v740_v38 }
 0x345   : > { %v797_v59 = vpack.c.bf16 %v781_v26, %v781_v26 }
 0x347   : > { %814 = vst.msk [vmem:[%s1693_s7 + $0x24] sm:$0xf] %vm804_vm3, %v797_v59 }
 0x34a   : > { %v1158_v62 = vpop.eup %1157 }
 0x34b   : > { %v782_v0 = vmul.f32 %v1158_v62, %v1661_v55  ;;  %v743_v44 = vpop.xlane.xlu1 %742 }
 0x34c   : > { %1159 = vrcp.f32 %v743_v44 }
 0x34d   : > { %v798_v33 = vpack.c.bf16 %v782_v0, %v782_v0 }
 0x34f   : > { %815 = vst.msk [vmem:[%s1693_s7 + $0x28] sm:$0xf] %vm804_vm3, %v798_v33 }
 0x352   : > { %v1160_v1 = vpop.eup %1159 }
 0x353   : > { %v783_v30 = vmul.f32 %v1160_v1, %v1666_v61  ;;  %v746_v50 = vpop.xlane.xlu2 %745 }
 0x354   : > { %1161 = vrcp.f32 %v746_v50 }
 0x355   : > { %v799_v5 = vpack.c.bf16 %v783_v30, %v783_v30 }
 0x357   : > { %816 = vst.msk [vmem:[%s1693_s7 + $0x2c] sm:$0xf] %vm804_vm3, %v799_v5 }
 0x35a   : > { %v1162_v40 = vpop.eup %1161 }
 0x35b   : > { %v784_v6 = vmul.f32 %v1162_v40, %v1671_v4  ;;  %v749_v55 = vpop.xlane.xlu1 %748 }
 0x35c   : > { %1163 = vrcp.f32 %v749_v55 }
 0x35d   : > { %v800_v36 = vpack.c.bf16 %v784_v6, %v784_v6 }
 0x35f   : > { %817 = vst.msk [vmem:[%s1693_s7 + $0x30] sm:$0xf] %vm804_vm3, %v800_v36 }
 0x362   : > { %v1164_v10 = vpop.eup %1163 }
 0x363   : > { %v785_v48 = vmul.f32 %v1164_v10, %v1676_v9  ;;  %v752_v61 = vpop.xlane.xlu2 %751 }
 0x364   : > { %1165 = vrcp.f32 %v752_v61 }
 0x365   : > { %v801_v11 = vpack.c.bf16 %v785_v48, %v785_v48 }
 0x367   : > { %818 = vst.msk [vmem:[%s1693_s7 + $0x34] sm:$0xf] %vm804_vm3, %v801_v11 }
 0x36a   : > { %v1166_v13 = vpop.eup %1165 }
 0x36b   : > { %v786_v16 = vmul.f32 %v1166_v13, %v1682_v15  ;;  %v755_v56 = vpop.xlane.xlu1 %754 }
 0x36c   : > { %1167 = vrcp.f32 %v755_v56 }
 0x36d   : > { %v802_v4 = vpack.c.bf16 %v786_v16, %v786_v16 }
 0x36f   : > { %819 = vst.msk [vmem:[%s1693_s7 + $0x38] sm:$0xf] %vm804_vm3, %v802_v4 }
 0x372   : > { %v1168_v17 = vpop.eup %1167 }
 0x373   : > { %v787_v18 = vmul.f32 %v1168_v17, %v1688_v45 }
 0x375   : > { %v803_v19 = vpack.c.bf16 %v787_v18, %v787_v18 }
 0x377   : > { %820 = vst.msk [vmem:[%s1693_s7 + $0x3c] sm:$0xf] %vm804_vm3, %v803_v19 }
 0x378 PF: > { %s21_s20 = sadd.s32 1, %s1351_s20   ;;  %s1778_s15 = smov %s1335_s16 }
 0x379   : > { %p18_p2 = scmp.ge.s32.totalorder %s21_s20, 4   ;;  %s1779_s16 = smov %s1339_s17 }
 0x37a   : > { %s1780_s17 = smov %s1464_s26  ;;  %s1781_s18 = smov %s1347_s19 }
 0x37b   : > { %s1782_s19 = smov %s1784_s11  ;;  %20 = sbr.rel (!%p18_p2) target bundleno = 9 (0x9), region = 105 }
 0x380   :  { %842 = vsyncpa [#allocation4], 1 }
 0x381   :  { %844 = vsyncpa [#allocation4 + $0x1], 1 }
 0x382   :  { %845 = vsyncpa [#allocation6], 1 }
 0x383   :  { %847 = vsyncpa [#allocation6 + $0x1], 1 }
 0x384   :  { %848 = vsyncpa [#allocation9], 1 }

// kernel: tpu_custom_call.1
= control target key start
LH: loop header
LB: loop body
LE: loop exit
PB: predicated region body
PF: predicated region fallthrough
CT: control target
= control target key end

     0   :  { %s1762_s0 = inlined_call_operand.hbm [shape: bf16[2,16,32], index: 0, kind: input, shape index: {}]   ;;  %s1763_s1 = inlined_call_operand.hbm [shape: bf16[2,16,64], index: 1, kind: input, shape index: {}]   ;;  %s1764_s2 = inlined_call_operand.hbm [shape: bf16[32,128], index: 2, kind: input, shape index: {}]   ;;  %s1765_s3 = inlined_call_operand.hbm [shape: bf16[64,64], index: 3, kind: input, shape index: {}]   ;;  %s1766_s4 = inlined_call_operand.vmem [shape: bf16[2,128,64], index: 4, kind: output, shape index: {}]  }
   0x1   :  { %1770 = sst [smem:[#allocation14_spill]] %s1764_s2 }
   0x2   :  { %9 = vsyncpa [#allocation4], 0 }
   0x3   :  { %11 = vsyncpa [#allocation4 + $0x1], 0 }
   0x4   :  { %12 = vsyncpa [#allocation6], 0 }
   0x5   :  { %14 = vsyncpa [#allocation6 + $0x1], 0 }
   0x6   :  { %15 = vsyncpa [#allocation9], 0  ;;  %s1383_s15 = smov 0   ;;  %s1385_s16 = smov 0  }
   0x7   :  { %s1387_s17 = smov 0   ;;  %s1389_s18 = smov 0  }
   0x8   :  { %s1391_s19 = smov 0   ;;  %s1393_s20 = smov 0  }
   0x9 LB: > { %s1767_s21 = sadd.s32 4294967295, %s1351_s20   ;;  %p55_p0 = scmp.ne.s32.totalorder %s1335_s16, %s1331_s15  ;;  %s1351_s20 = sphi %s1393_s20, %s21_s20   ;;  %s1347_s19 = sphi %s1391_s19, %s1782_s19   ;;  %s1343_s18 = sphi %s1389_s18, %s1781_s18   ;;  %s1339_s17 = sphi %s1387_s17, %s1780_s17   ;;  %s1335_s16 = sphi %s1385_s16, %s1779_s16   ;;  %s1331_s15 = sphi %s1383_s15, %s1778_s15  }
   0xa   : > { %p1415_p1 = scmp.eq.s32.totalorder %s1767_s21, 0  ;;  %p946_p2 = scmp.ge.s32.totalorder %s1351_s20, 1 }
   0xb   : > { %p162_p3 = scmp.lt.s32.totalorder %s1351_s20, 3  ;;  %s1773_s2 = sld [smem:[#allocation14_spill]] }
   0xc   : > { %p1423_p4 = por %p1415_p1, %p55_p0  ;;  %s1353_s28 = smov [#allocation7]  }
   0xd   : > { %p1430_p5 = pnand %p946_p2, %p162_p3  ;;  %s175_s29 = sshll.u32 %s1353_s28, 4  ;;  %s176_s29 = int_to_ptr.vmem [resolvable:$true] %s175_s29 }
   0xe   : > { %s187_s6 = sshll.u32 %s1765_s3, 4  ;;  %s1768_s7 = smov 64   ;;  %s188_s6 = int_to_ptr.hbm [resolvable:$true] %s187_s6 }
   0xf   : > { %p1032_p6 = pneg %p1430_p5  ;;  %s1355_s8 = smov 4  }
  0x10   : > { %s1356_s9 = smov [#allocation8]   ;;  %s33_s11 = sadd.s32 1, %s1347_s19 }
  0x11   : > { %s173_s26 = sshll.u32 %s1773_s2, 4  ;;  %p1033_p7 = pnand %p1032_p6, %p1415_p1  ;;  %s174_s26 = int_to_ptr.hbm [resolvable:$true] %s173_s26 }
  0x12   : > { %s189_s10 = sshll.u32 %s1356_s9, 4  ;;  %s42_s12 = sadd.s32 1, %s1339_s17  ;;  %s190_s10 = int_to_ptr.vmem [resolvable:$true] %s189_s10 }
  0x13   : > { %1035 = dma.hbm_to_vmem [thread:$0]  (!%p1033_p7), %s174_s26, 256, %s176_s29, [#allocation6], %s1768_s7, %s1768_s7, %s1355_s8  }
  0x14   : > { %1038 = dma.hbm_to_vmem [thread:$0]  (!%p1033_p7), %s188_s6, 512, %s190_s10, [#allocation9], %s1768_s7, %s1768_s7, %s1355_s8  }
  0x15   : > { %p35_p8 = scmp.ge.s32.totalorder %s33_s11, 2  ;;  %p49_p9 = scmp.ne.s32.totalorder %s1339_s17, %s1335_s16 }
  0x16   : > { %p50_p10 = scmp.eq.s32.totalorder %s1351_s20, 0  ;;  %p1048_p11 = scmp.lt.s32.totalorder %s1351_s20, 2 }
  0x17   : > { %s1784_s11 = smov (%p35_p8, %s33_s11), 0  ;;  %s203_s14 = sand.u32 1, %s1339_s17  }
  0x18   : > { %p1455_p12 = por %p50_p10, %p49_p9  ;;  %s37_s15 = ssub.s32 %s1347_s19, %s1784_s11 }
  0x19   : > { %p40_p13 = scmp.eq.s32.totalorder %s37_s15, 0  ;;  %s950_s24 = sshll.u32 %s203_s14, 3 }
  0x1a   : > { %s1007_s25 = sshll.u32 %s1347_s19, 3  ;;  %s207_s5 = scalar_lea.vmem [#allocation3], %s950_s24 }
  0x1b   : > { %s1464_s26 = scalar_select %p40_p13, %s1339_s17, %s42_s12  }
  0x1c   : > { %s214_s30 = scalar_lea.hbm %s1762_s0, %s1007_s25  ;;  %s217_s6 = sshll.u32 %s207_s5, 4  ;;  %s218_s6 = int_to_ptr.vmem [resolvable:$true] %s217_s6 }
  0x1d   : > { %s215_s9 = sshll.u32 %s214_s30, 4  ;;  %p1040_p0 = pnand %p1048_p11, %p1455_p12  ;;  %s216_s9 = int_to_ptr.hbm [resolvable:$true] %s215_s9 }
  0x1e   : > { %s238_s15 = scalar_lea.hbm %s1763_s1, %s1007_s25  ;;  %s204_s12 = scalar_lea.sflag [#allocation4], %s203_s14 }
  0x1f   : > { %s239_s7 = sshll.u32 %s238_s15, 4  ;;  %s1776_s2 = smov 64   ;;  %s240_s7 = int_to_ptr.hbm [resolvable:$true] %s239_s7 }
  0x20   : > { %1042 = dma.hbm_to_vmem [thread:$0]  (!%p1040_p0), %s216_s9, 128, %s218_s6, %s204_s12, %s1776_s2, %s1776_s2, %s1355_s8  }
  0x21   : > { %s231_s28 = scalar_lea.vmem [#allocation5], %s950_s24  ;;  %s227_s30 = sand.u32 1, %s1351_s20  }
  0x22   : > { %s241_s29 = sshll.u32 %s231_s28, 4  ;;  %s228_s5 = scalar_lea.sflag [#allocation6], %s227_s30  ;;  %s242_s29 = int_to_ptr.vmem [resolvable:$true] %s241_s29 }
  0x23   : > { %1045 = dma.hbm_to_vmem [thread:$0]  (!%p1040_p0), %s240_s7, 128, %s242_s29, %s228_s5, %s1776_s2, %s1776_s2, %s1355_s8  }
  0x24   : > { %253 = sbr.rel (%p1430_p5) target bundleno = 888 (0x378), region = 36  ;;  %s255_s21 = sand.u32 (!%p1430_p5), 1, %s1335_s16  }
  0x25   : > { %s957_s13 = sshll.u32 (!%p1430_p5), %s255_s21, 3  ;;  %s256_s14 = scalar_lea.sflag (!%p1430_p5), [#allocation4], %s255_s21 }
  0x26   : > { %s259_s25 = scalar_lea.vmem (!%p1430_p5), [#allocation3], %s957_s13 }
  0x29   : > { %1314 = dma.done.wait (%p1423_p4), %s256_s14, 128  }
  0x2a   : > { %1316 = vsyncadd (%p1423_p4), %s256_s14, 4294967168  ;;  %s1777_s24 = sadd.s32 4294967295, %s1351_s20   ;;  %s269_s2 = scalar_lea.vmem [#allocation5], %s957_s13 }
  0x2b   : > { %s265_s6 = sand.u32 1, %s1777_s24  }
  0x2c   : > { %s266_s9 = scalar_lea.sflag [#allocation6], %s265_s6 }
  0x2d   : > { %1318 = dma.done.wait (%p1423_p4), %s266_s9, 128  }
  0x2e   : > { %1320 = vsyncadd (%p1423_p4), %s266_s9, 4294967168 }
  0x2f   : > { %1322 = dma.done.wait (%p1415_p1), [#allocation6], 256  }
  0x30   : > { %1324 = vsyncadd (%p1415_p1), [#allocation6], 4294967040 }
  0x31   : > { %1326 = dma.done.wait (%p1415_p1), [#allocation9], 512  }
  0x32   : > { %1328 = vsyncadd (%p1415_p1), [#allocation9], 4294966784  ;;  %v1013_v0 = vld [vmem:[#allocation7 + $0x8] sm:$0xff]  ;;  %v1012_v1 = vld [vmem:[#allocation7] sm:$0xff]  ;;  %vm364_vm0 = vcmask 261120   ;;  %vm322_vm1 = vcmask 523264  }
  0x33   : > { %374 = vmatpush.bf16.msra.mxu1 %v1013_v0  ;;  %v1010_v2 = vld [vmem:[%s259_s25] sm:$0xff]  ;;  %v1015_v5 = vld [vmem:[#allocation8 + $0x8] sm:$0xff]  ;;  %v1014_v6 = vld [vmem:[#allocation8] sm:$0xff]  ;;  %vm471_vm2 = vcmask 130048   ;;  %v1357_v20 = vmov 0.0   ;;  %p312_p1 = scmp.lt.s32.totalorder %s1343_s18, 1 }
  0x34   : > { %v1017_v3 = vld [vmem:[#allocation8 + $0x18] sm:$0xff]  ;;  %v1016_v4 = vld [vmem:[#allocation8 + $0x10] sm:$0xff]  ;;  %v1011_v7 = vld [vmem:[%s269_s2] sm:$0xff]  ;;  %323 = vst.msk [vmem:[#allocation2] sm:$0xff] %vm322_vm1, %v1357_v20  ;;  %vm804_vm3 = vcmask 519168  }
  0x35   : > { %324 = vst.msk [vmem:[#allocation2 + $0x8] sm:$0xff] %vm322_vm1, %v1357_v20  ;;  %s1786_s18 = smov (!%p312_p1, %s1343_s18), 1 }
  0x36   : > { %325 = vst.msk [vmem:[#allocation2 + $0x10] sm:$0xff] %vm322_vm1, %v1357_v20  ;;  %s1009_s22 = sshll.u32 %s1786_s18, 6 }
  0x37   : > { %375 = vmatpush.bf16.msra.mxu1 %v1012_v1  ;;  %326 = vst.msk [vmem:[#allocation2 + $0x18] sm:$0xff] %vm322_vm1, %v1357_v20  ;;  %s1693_s7 = scalar_lea.vmem %s1766_s4, %s1009_s22 }
  0x38   : > { %327 = vst.msk [vmem:[#allocation2 + $0x20] sm:$0xff] %vm322_vm1, %v1357_v20 }
  0x39   : > { %328 = vst.msk [vmem:[#allocation2 + $0x28] sm:$0xff] %vm322_vm1, %v1357_v20 }
  0x3a   : > { %975 = vmatmul.msk.bf16.vlgmr.msra.gmra.mxu1 %vm364_vm0, %v1010_v2  ;;  %329 = vst.msk [vmem:[#allocation2 + $0x30] sm:$0xff] %vm322_vm1, %v1357_v20 }
  0x3b   : > { %427 = vmatpush.bf16.msrb.mxu1 %v1017_v3  ;;  %330 = vst.msk [vmem:[#allocation2 + $0x38] sm:$0xff] %vm322_vm1, %v1357_v20  ;;  %v437_v23 = vld [vmem:[#allocation2] sm:$0xff] }
  0x3c   : > { %331 = vst.msk [vmem:[#allocation2 + $0x40] sm:$0xff] %vm322_vm1, %v1357_v20  ;;  %v438_v26 = vld [vmem:[#allocation2 + $0x8] sm:$0xff] }
  0x3d   : > { %332 = vst.msk [vmem:[#allocation2 + $0x48] sm:$0xff] %vm322_vm1, %v1357_v20  ;;  %v439_v32 = vld [vmem:[#allocation2 + $0x10] sm:$0xff] }
  0x3e   : > { %333 = vst.msk [vmem:[#allocation2 + $0x50] sm:$0xff] %vm322_vm1, %v1357_v20  ;;  %v440_v38 = vld [vmem:[#allocation2 + $0x18] sm:$0xff] }
  0x3f   : > { %428 = vmatpush.bf16.msrb.mxu1 %v1016_v4  ;;  %334 = vst.msk [vmem:[#allocation2 + $0x58] sm:$0xff] %vm322_vm1, %v1357_v20  ;;  %v441_v46 = vld [vmem:[#allocation2 + $0x20] sm:$0xff] }
  0x40   : > { %335 = vst.msk [vmem:[#allocation2 + $0x60] sm:$0xff] %vm322_vm1, %v1357_v20  ;;  %v442_v50 = vld [vmem:[#allocation2 + $0x28] sm:$0xff] }
  0x41   : > { %336 = vst.msk [vmem:[#allocation2 + $0x68] sm:$0xff] %vm322_vm1, %v1357_v20  ;;  %v443_v56 = vld [vmem:[#allocation2 + $0x30] sm:$0xff] }
  0x42   : > { %337 = vst.msk [vmem:[#allocation2 + $0x70] sm:$0xff] %vm322_vm1, %v1357_v20  ;;  %v444_v62 = vld [vmem:[#allocation2 + $0x38] sm:$0xff] }
  0x43   : > { %429 = vmatpush.bf16.msrb.mxu1 %v1015_v5  ;;  %338 = vst.msk [vmem:[#allocation2 + $0x78] sm:$0xff] %vm322_vm1, %v1357_v20  ;;  %v445_v4 = vld [vmem:[#allocation2 + $0x40] sm:$0xff] }
  0x47   : > { %430 = vmatpush.bf16.msrb.mxu1 %v1014_v6 }
  0x4a   : > { %996 = vmatmul.msk.bf16.vlgmr.msrb.gmra.mxu1 %vm322_vm1, %v1011_v7 }
  0xb7   : > { %v377_v8 = vpop.f32.mrf.mxu1 }
  0xbf   : > { %v379_v9 = vpop.f32.mrf.mxu1 }
  0xc0   : > { %v453_v10 = vpack.c.bf16 %v379_v9, %v377_v8 }
  0xc2   : > { %455 = vxpose.xlu0.c.b16.start.end [1/1] (short) %v453_v10, 128  ;;  %v446_v10 = vld [vmem:[#allocation2 + $0x48] sm:$0xff] }
  0xc7   : > { %v432_v11 = vpop.f32.mrf.mxu1 }
  0xcf   : > { %v434_v12 = vpop.f32.mrf.mxu1 }
  0xd0   : > { %v454_v13 = vpack.c.bf16 %v434_v12, %v432_v11 }
  0xd2   : > { %503 = vmatpush.bf16.msra.mxu0 %v454_v13  ;;  %1018 = vmatpush.bf16.msra.mxu2 %v454_v13 }
  0xd3   : > { %1019 = vmatpush.bf16.msra.mxu3 %v454_v13 }
 0x16e   : > { %v463_v14 = vpop.trf.xlu0 }
 0x16f   : > { %997 = vmatmul.msk.bf16.vlgmr.msra.gmra.mxu0 %vm471_vm2, %v463_v14 }
 0x17e   : > { %v464_v15 = vpop.trf.xlu0 }
 0x17f   : > { %998 = vmatmul.msk.bf16.gmra.mxu0 %vm471_vm2, %v464_v15 }
 0x18e   : > { %v465_v16 = vpop.trf.xlu0 }
 0x18f   : > { %999 = vmatmul.msk.bf16.vlgmr.msra.gmra.mxu2 %vm471_vm2, %v465_v16  ;;  %v447_v16 = vld [vmem:[#allocation2 + $0x50] sm:$0xff] }
 0x19e   : > { %v466_v17 = vpop.trf.xlu0 }
 0x19f   : > { %1000 = vmatmul.msk.bf16.gmra.mxu2 %vm471_vm2, %v466_v17 }
 0x1ae   : > { %v467_v18 = vpop.trf.xlu0 }
 0x1af   : > { %1001 = vmatmul.msk.bf16.gmra.mxu2 %vm471_vm2, %v467_v18 }
 0x1be   : > { %v468_v19 = vpop.trf.xlu0 }
 0x1bf   : > { %1002 = vmatmul.msk.bf16.vlgmr.msra.gmra.mxu3 %vm471_vm2, %v468_v19 }
 0x1ce   : > { %v469_v21 = vpop.trf.xlu0 }
 0x1cf   : > { %1003 = vmatmul.msk.bf16.gmra.mxu3 %vm471_vm2, %v469_v21 }
 0x1de   : > { %v470_v22 = vpop.trf.xlu0 }
 0x1df   : > { %1004 = vmatmul.msk.bf16.gmra.mxu3 %vm471_vm2, %v470_v22  ;;  %v448_v22 = vld [vmem:[#allocation2 + $0x58] sm:$0xff] }
 0x1ec   : > { %v505_v24 = vpop.f32.mrf.mxu0 }
 0x1ed   : > { %v545_v25 = vadd.f32 %v505_v24, %v437_v23 }
 0x1ef   : > { %561 = vst.msk [vmem:[#allocation2] sm:$0xff] %vm322_vm1, %v545_v25 }
 0x1f4   : > { %v507_v27 = vpop.f32.mrf.mxu0 }
 0x1f5   : > { %v546_v28 = vadd.f32 %v507_v27, %v438_v26 }
 0x1f6   : > { %v580_v29 = vld [vmem:[#allocation2] sm:$0xff] }
 0x1f7   : > { %562 = vst.msk [vmem:[#allocation2 + $0x8] sm:$0xff] %vm322_vm1, %v546_v28  ;;  %v1531_v30 = vmul.f32 0.17677669, %v580_v29  ;;  %v449_v28 = vld [vmem:[#allocation2 + $0x60] sm:$0xff] }
 0x1f9   : > { %v612_v31 = vsel %vm322_vm1, %v1531_v30, -inf }
 0x1fa   : > { %613 = vmax.xlane.f32.xlu0 %v612_v31 }
 0x1fc   : > { %v510_v33 = vpop.f32.mrf.mxu0 }
 0x1fd   : > { %v547_v34 = vadd.f32 %v510_v33, %v439_v32 }
 0x1fe   : > { %v581_v35 = vld [vmem:[#allocation2 + $0x8] sm:$0xff] }
 0x1ff   : > { %563 = vst.msk [vmem:[#allocation2 + $0x10] sm:$0xff] %vm322_vm1, %v547_v34  ;;  %v1536_v36 = vmul.f32 0.17677669, %v581_v35  ;;  %v450_v35 = vld [vmem:[#allocation2 + $0x68] sm:$0xff] }
 0x201   : > { %v615_v37 = vsel %vm322_vm1, %v1536_v36, -inf }
 0x202   : > { %616 = vmax.xlane.f32.xlu1 %v615_v37 }
 0x204   : > { %v512_v39 = vpop.f32.mrf.mxu0 }
 0x205   : > { %v548_v40 = vadd.f32 %v512_v39, %v440_v38 }
 0x206   : > { %v582_v41 = vld [vmem:[#allocation2 + $0x10] sm:$0xff] }
 0x207   : > { %564 = vst.msk [vmem:[#allocation2 + $0x18] sm:$0xff] %vm322_vm1, %v548_v40  ;;  %v1541_v42 = vmul.f32 0.17677669, %v582_v41 }
 0x209   : > { %v618_v43 = vsel %vm322_vm1, %v1541_v42, -inf }
 0x20a   : > { %619 = vmax.xlane.f32.xlu1 %v618_v43  ;;  %v451_v43 = vld [vmem:[#allocation2 + $0x70] sm:$0xff] }
 0x20e   : > { %v583_v44 = vld [vmem:[#allocation2 + $0x18] sm:$0xff] }
 0x20f   : > { %v1545_v45 = vmul.f32 0.17677669, %v583_v44 }
 0x211   : > { %v621_v47 = vsel %vm322_vm1, %v1545_v45, -inf }
 0x212   : > { %v515_v48 = vpop.f32.mrf.mxu2  ;;  %622 = vmax.xlane.f32.xlu2 %v621_v47 }
 0x213   : > { %v549_v49 = vadd.f32 %v515_v48, %v441_v46 }
 0x215   : > { %565 = vst.msk [vmem:[#allocation2 + $0x20] sm:$0xff] %vm322_vm1, %v549_v49 }
 0x21a   : > { %v517_v51 = vpop.f32.mrf.mxu2 }
 0x21b   : > { %v550_v52 = vadd.f32 %v517_v51, %v442_v50  ;;  %v452_v50 = vld [vmem:[#allocation2 + $0x78] sm:$0xff] }
 0x21c   : > { %v584_v53 = vld [vmem:[#allocation2 + $0x20] sm:$0xff] }
 0x21d   : > { %566 = vst.msk [vmem:[#allocation2 + $0x28] sm:$0xff] %vm322_vm1, %v550_v52  ;;  %v1551_v54 = vmul.f32 0.17677669, %v584_v53 }
 0x21f   : > { %v624_v55 = vsel %vm322_vm1, %v1551_v54, -inf }
 0x220   : > { %625 = vmax.xlane.f32.xlu2 %v624_v55 }
 0x222   : > { %v520_v57 = vpop.f32.mrf.mxu2 }
 0x223   : > { %v551_v58 = vadd.f32 %v520_v57, %v443_v56 }
 0x224   : > { %v585_v59 = vld [vmem:[#allocation2 + $0x28] sm:$0xff] }
 0x225   : > { %567 = vst.msk [vmem:[#allocation2 + $0x30] sm:$0xff] %vm322_vm1, %v551_v58  ;;  %v1556_v60 = vmul.f32 0.17677669, %v585_v59 }
 0x227   : > { %v627_v61 = vsel %vm322_vm1, %v1556_v60, -inf }
 0x228   : > { %628 = vmax.xlane.f32.xlu1 %v627_v61 }
 0x22a   : > { %v522_v63 = vpop.f32.mrf.mxu2 }
 0x22b   : > { %v552_v0 = vadd.f32 %v522_v63, %v444_v62 }
 0x22c   : > { %v586_v1 = vld [vmem:[#allocation2 + $0x30] sm:$0xff] }
 0x22d   : > { %568 = vst.msk [vmem:[#allocation2 + $0x38] sm:$0xff] %vm322_vm1, %v552_v0  ;;  %v1561_v2 = vmul.f32 0.17677669, %v586_v1 }
 0x22f   : > { %v630_v3 = vsel %vm322_vm1, %v1561_v2, -inf }
 0x230   : > { %631 = vmax.xlane.f32.xlu2 %v630_v3 }
 0x232   : > { %v525_v5 = vpop.f32.mrf.mxu2 }
 0x233   : > { %v553_v6 = vadd.f32 %v525_v5, %v445_v4 }
 0x234   : > { %v587_v7 = vld [vmem:[#allocation2 + $0x38] sm:$0xff] }
 0x235   : > { %569 = vst.msk [vmem:[#allocation2 + $0x40] sm:$0xff] %vm322_vm1, %v553_v6  ;;  %v1566_v8 = vmul.f32 0.17677669, %v587_v7 }
 0x237   : > { %v633_v9 = vsel %vm322_vm1, %v1566_v8, -inf }
 0x238   : > { %634 = vmax.xlane.f32.xlu1 %v633_v9 }
 0x23a   : > { %v527_v11 = vpop.f32.mrf.mxu2 }
 0x23b   : > { %v554_v12 = vadd.f32 %v527_v11, %v446_v10 }
 0x23c   : > { %v588_v13 = vld [vmem:[#allocation2 + $0x40] sm:$0xff] }
 0x23d   : > { %570 = vst.msk [vmem:[#allocation2 + $0x48] sm:$0xff] %vm322_vm1, %v554_v12  ;;  %v1571_v14 = vmul.f32 0.17677669, %v588_v13 }
 0x23f   : > { %v636_v15 = vsel %vm322_vm1, %v1571_v14, -inf }
 0x240   : > { %637 = vmax.xlane.f32.xlu2 %v636_v15 }
 0x242   : > { %v530_v17 = vpop.f32.mrf.mxu3 }
 0x243   : > { %v555_v18 = vadd.f32 %v530_v17, %v447_v16 }
 0x244   : > { %v589_v19 = vld [vmem:[#allocation2 + $0x48] sm:$0xff] }
 0x245   : > { %571 = vst.msk [vmem:[#allocation2 + $0x50] sm:$0xff] %vm322_vm1, %v555_v18  ;;  %v1576_v20 = vmul.f32 0.17677669, %v589_v19 }
 0x247   : > { %v639_v21 = vsel %vm322_vm1, %v1576_v20, -inf }
 0x248   : > { %640 = vmax.xlane.f32.xlu1 %v639_v21 }
 0x24a   : > { %v532_v23 = vpop.f32.mrf.mxu3 }
 0x24b   : > { %v556_v24 = vadd.f32 %v532_v23, %v448_v22 }
 0x24c   : > { %v590_v25 = vld [vmem:[#allocation2 + $0x50] sm:$0xff] }
 0x24d   : > { %572 = vst.msk [vmem:[#allocation2 + $0x58] sm:$0xff] %vm322_vm1, %v556_v24  ;;  %v1581_v26 = vmul.f32 0.17677669, %v590_v25 }
 0x24f   : > { %v642_v27 = vsel %vm322_vm1, %v1581_v26, -inf }
 0x250   : > { %643 = vmax.xlane.f32.xlu2 %v642_v27 }
 0x252   : > { %v535_v29 = vpop.f32.mrf.mxu3 }
 0x253   : > { %v557_v31 = vadd.f32 %v535_v29, %v449_v28 }
 0x254   : > { %v591_v32 = vld [vmem:[#allocation2 + $0x58] sm:$0xff] }
 0x255   : > { %573 = vst.msk [vmem:[#allocation2 + $0x60] sm:$0xff] %vm322_vm1, %v557_v31  ;;  %v1586_v33 = vmul.f32 0.17677669, %v591_v32 }
 0x257   : > { %v645_v34 = vsel %vm322_vm1, %v1586_v33, -inf }
 0x258   : > { %646 = vmax.xlane.f32.xlu1 %v645_v34 }
 0x25a   : > { %v537_v37 = vpop.f32.mrf.mxu3 }
 0x25b   : > { %v558_v38 = vadd.f32 %v537_v37, %v450_v35 }
 0x25c   : > { %v592_v39 = vld [vmem:[#allocation2 + $0x60] sm:$0xff] }
 0x25d   : > { %574 = vst.msk [vmem:[#allocation2 + $0x68] sm:$0xff] %vm322_vm1, %v558_v38  ;;  %v1591_v40 = vmul.f32 0.17677669, %v592_v39 }
 0x25f   : > { %v648_v41 = vsel %vm322_vm1, %v1591_v40, -inf }
 0x260   : > { %649 = vmax.xlane.f32.xlu2 %v648_v41 }
 0x262   : > { %v540_v44 = vpop.f32.mrf.mxu3 }
 0x263   : > { %v559_v46 = vadd.f32 %v540_v44, %v451_v43 }
 0x264   : > { %v593_v47 = vld [vmem:[#allocation2 + $0x68] sm:$0xff] }
 0x265   : > { %575 = vst.msk [vmem:[#allocation2 + $0x70] sm:$0xff] %vm322_vm1, %v559_v46  ;;  %v1596_v48 = vmul.f32 0.17677669, %v593_v47 }
 0x267   : > { %v651_v49 = vsel %vm322_vm1, %v1596_v48, -inf }
 0x268   : > { %652 = vmax.xlane.f32.xlu1 %v651_v49 }
 0x26a   : > { %v542_v51 = vpop.f32.mrf.mxu3 }
 0x26b   : > { %v560_v52 = vadd.f32 %v542_v51, %v452_v50 }
 0x26c   : > { %v594_v53 = vld [vmem:[#allocation2 + $0x70] sm:$0xff] }
 0x26d   : > { %576 = vst.msk [vmem:[#allocation2 + $0x78] sm:$0xff] %vm322_vm1, %v560_v52  ;;  %v614_v55 = vpop.xlane.xlu0 %613  ;;  %v1601_v56 = vmul.f32 0.17677669, %v594_v53 }
 0x26e   : > { %v660_v57 = vsub.f32 %v1531_v30, %v614_v55 }
 0x26f   : > { %v654_v58 = vsel %vm322_vm1, %v1601_v56, -inf }
 0x270   : > { %v676_v59 = vmul.f32 1.442695, %v660_v57  ;;  %655 = vmax.xlane.f32.xlu2 %v654_v58 }
 0x272   : > { %1105 = vpow2.f32 %v676_v59 }
 0x274   : > { %v595_v61 = vld [vmem:[#allocation2 + $0x78] sm:$0xff] }
 0x275   : > { %v617_v62 = vpop.xlane.xlu1 %616  ;;  %v1606_v63 = vmul.f32 0.17677669, %v595_v61 }
 0x276   : > { %v661_v0 = vsub.f32 %v1536_v36, %v617_v62 }
 0x277   : > { %v657_v1 = vsel %vm322_vm1, %v1606_v63, -inf }
 0x278   : > { %v1611_v3 = vpop.eup %1105  ;;  %v678_v4 = vmul.f32 1.442695, %v661_v0  ;;  %658 = vmax.xlane.f32.xlu1 %v657_v1 }
 0x279   : > { %v708_v30 = vsel %vm322_vm1, %v1611_v3, 0.0 }
 0x27a   : > { %1107 = vpow2.f32 %v678_v4  ;;  %709 = vadd.xlane.f32.xlu2 %v708_v30 }
 0x27d   : > { %v620_v5 = vpop.xlane.xlu1 %619 }
 0x27e   : > { %v662_v6 = vsub.f32 %v1541_v42, %v620_v5 }
 0x280   : > { %v1616_v7 = vpop.eup %1107  ;;  %v680_v9 = vmul.f32 1.442695, %v662_v6 }
 0x281   : > { %v711_v36 = vsel %vm322_vm1, %v1616_v7, 0.0 }
 0x282   : > { %1109 = vpow2.f32 %v680_v9  ;;  %712 = vadd.xlane.f32.xlu1 %v711_v36 }
 0x285   : > { %v623_v10 = vpop.xlane.xlu2 %622 }
 0x286   : > { %v663_v11 = vsub.f32 %v1545_v45, %v623_v10 }
 0x288   : > { %v1621_v12 = vpop.eup %1109  ;;  %v682_v13 = vmul.f32 1.442695, %v663_v11 }
 0x289   : > { %v714_v15 = vsel %vm322_vm1, %v1621_v12, 0.0 }
 0x28a   : > { %1111 = vpow2.f32 %v682_v13  ;;  %715 = vadd.xlane.f32.xlu2 %v714_v15 }
 0x290   : > { %v1625_v42 = vpop.eup %1111 }
 0x291   : > { %v717_v16 = vsel %vm322_vm1, %v1625_v42, 0.0 }
 0x292   : > { %718 = vadd.xlane.f32.xlu1 %v717_v16 }
 0x293   : > { %v626_v17 = vpop.xlane.xlu2 %625 }
 0x294   : > { %v664_v18 = vsub.f32 %v1551_v54, %v626_v17 }
 0x296   : > { %v684_v19 = vmul.f32 1.442695, %v664_v18 }
 0x298   : > { %1113 = vpow2.f32 %v684_v19 }
 0x29b   : > { %v629_v45 = vpop.xlane.xlu1 %628 }
 0x29c   : > { %v665_v21 = vsub.f32 %v1556_v60, %v629_v45 }
 0x29e   : > { %v1631_v22 = vpop.eup %1113  ;;  %v686_v23 = vmul.f32 1.442695, %v665_v21 }
 0x29f   : > { %v720_v24 = vsel %vm322_vm1, %v1631_v22, 0.0 }
 0x2a0   : > { %1115 = vpow2.f32 %v686_v23  ;;  %721 = vadd.xlane.f32.xlu2 %v720_v24 }
 0x2a3   : > { %v632_v25 = vpop.xlane.xlu2 %631 }
 0x2a4   : > { %v666_v27 = vsub.f32 %v1561_v2, %v632_v25 }
 0x2a6   : > { %v1636_v28 = vpop.eup %1115  ;;  %v688_v29 = vmul.f32 1.442695, %v666_v27 }
 0x2a7   : > { %v723_v54 = vsel %vm322_vm1, %v1636_v28, 0.0 }
 0x2a8   : > { %1117 = vpow2.f32 %v688_v29  ;;  %724 = vadd.xlane.f32.xlu1 %v723_v54 }
 0x2ab   : > { %v635_v60 = vpop.xlane.xlu1 %634 }
 0x2ac   : > { %v667_v31 = vsub.f32 %v1566_v8, %v635_v60 }
 0x2ae   : > { %v1641_v32 = vpop.eup %1117  ;;  %v690_v34 = vmul.f32 1.442695, %v667_v31 }
 0x2af   : > { %v726_v35 = vsel %vm322_vm1, %v1641_v32, 0.0 }
 0x2b0   : > { %1119 = vpow2.f32 %v690_v34  ;;  %727 = vadd.xlane.f32.xlu2 %v726_v35 }
 0x2b3   : > { %v638_v2 = vpop.xlane.xlu2 %637 }
 0x2b4   : > { %v668_v37 = vsub.f32 %v1571_v14, %v638_v2 }
 0x2b6   : > { %v1646_v38 = vpop.eup %1119  ;;  %v692_v39 = vmul.f32 1.442695, %v668_v37 }
 0x2b7   : > { %v729_v41 = vsel %vm322_vm1, %v1646_v38, 0.0 }
 0x2b8   : > { %1121 = vpow2.f32 %v692_v39  ;;  %730 = vadd.xlane.f32.xlu1 %v729_v41 }
 0x2bb   : > { %v641_v8 = vpop.xlane.xlu1 %640 }
 0x2bc   : > { %v669_v43 = vsub.f32 %v1576_v20, %v641_v8 }
 0x2be   : > { %v1651_v44 = vpop.eup %1121  ;;  %v694_v46 = vmul.f32 1.442695, %v669_v43 }
 0x2bf   : > { %v732_v47 = vsel %vm322_vm1, %v1651_v44, 0.0 }
 0x2c0   : > { %1123 = vpow2.f32 %v694_v46  ;;  %733 = vadd.xlane.f32.xlu2 %v732_v47 }
 0x2c3   : > { %v644_v14 = vpop.xlane.xlu2 %643 }
 0x2c4   : > { %v670_v49 = vsub.f32 %v1581_v26, %v644_v14 }
 0x2c6   : > { %v1656_v50 = vpop.eup %1123  ;;  %v696_v51 = vmul.f32 1.442695, %v670_v49 }
 0x2c7   : > { %v735_v52 = vsel %vm322_vm1, %v1656_v50, 0.0 }
 0x2c8   : > { %1125 = vpow2.f32 %v696_v51  ;;  %736 = vadd.xlane.f32.xlu1 %v735_v52 }
 0x2cb   : > { %v647_v20 = vpop.xlane.xlu1 %646 }
 0x2cc   : > { %v671_v53 = vsub.f32 %v1586_v33, %v647_v20 }
 0x2ce   : > { %v1661_v55 = vpop.eup %1125  ;;  %v698_v57 = vmul.f32 1.442695, %v671_v53 }
 0x2cf   : > { %v738_v58 = vsel %vm322_vm1, %v1661_v55, 0.0 }
 0x2d0   : > { %1127 = vpow2.f32 %v698_v57  ;;  %739 = vadd.xlane.f32.xlu2 %v738_v58 }
 0x2d3   : > { %v650_v26 = vpop.xlane.xlu2 %649 }
 0x2d4   : > { %v672_v59 = vsub.f32 %v1591_v40, %v650_v26 }
 0x2d6   : > { %v1666_v61 = vpop.eup %1127  ;;  %v700_v62 = vmul.f32 1.442695, %v672_v59 }
 0x2d7   : > { %v741_v0 = vsel %vm322_vm1, %v1666_v61, 0.0 }
 0x2d8   : > { %1129 = vpow2.f32 %v700_v62  ;;  %742 = vadd.xlane.f32.xlu1 %v741_v0 }
 0x2db   : > { %v653_v33 = vpop.xlane.xlu1 %652 }
 0x2dc   : > { %v673_v1 = vsub.f32 %v1596_v48, %v653_v33 }
 0x2de   : > { %v1671_v4 = vpop.eup %1129  ;;  %v702_v30 = vmul.f32 1.442695, %v673_v1 }
 0x2df   : > { %v744_v5 = vsel %vm322_vm1, %v1671_v4, 0.0 }
 0x2e0   : > { %1131 = vpow2.f32 %v702_v30  ;;  %745 = vadd.xlane.f32.xlu2 %v744_v5 }
 0x2e3   : > { %v656_v40 = vpop.xlane.xlu2 %655 }
 0x2e4   : > { %v674_v6 = vsub.f32 %v1601_v56, %v656_v40 }
 0x2e6   : > { %v1676_v9 = vpop.eup %1131  ;;  %v704_v36 = vmul.f32 1.442695, %v674_v6 }
 0x2e7   : > { %v747_v10 = vsel %vm322_vm1, %v1676_v9, 0.0 }
 0x2e8   : > { %1133 = vpow2.f32 %v704_v36  ;;  %748 = vadd.xlane.f32.xlu1 %v747_v10 }
 0x2eb   : > { %v659_v48 = vpop.xlane.xlu1 %658 }
 0x2ec   : > { %v675_v11 = vsub.f32 %v1606_v63, %v659_v48 }
 0x2ed   : > { %v710_v13 = vpop.xlane.xlu2 %709 }
 0x2ee   : > { %v1682_v15 = vpop.eup %1133  ;;  %v706_v16 = vmul.f32 1.442695, %v675_v11  ;;  %1135 = vrcp.f32 %v710_v13 }
 0x2ef   : > { %v750_v56 = vsel %vm322_vm1, %v1682_v15, 0.0 }
 0x2f0   : > { %1137 = vpow2.f32 %v706_v16  ;;  %751 = vadd.xlane.f32.xlu2 %v750_v56 }
 0x2f4   : > { %v1136_v17 = vpop.eup %1135 }
 0x2f5   : > { %v772_v18 = vmul.f32 %v1136_v17, %v1611_v3  ;;  %v713_v19 = vpop.xlane.xlu1 %712 }
 0x2f6   : > { %v1688_v45 = vpop.eup %1137  ;;  %1139 = vrcp.f32 %v713_v19 }
 0x2f7   : > { %v788_v63 = vpack.c.bf16 %v772_v18, %v772_v18  ;;  %v753_v21 = vsel %vm322_vm1, %v1688_v45, 0.0 }
 0x2f8   : > { %754 = vadd.xlane.f32.xlu1 %v753_v21 }
 0x2f9   : > { %805 = vst.msk [vmem:[%s1693_s7] sm:$0xf] %vm804_vm3, %v788_v63 }
 0x2fc   : > { %v1140_v3 = vpop.eup %1139 }
 0x2fd   : > { %v773_v23 = vmul.f32 %v1140_v3, %v1616_v7  ;;  %v716_v24 = vpop.xlane.xlu2 %715 }
 0x2fe   : > { %1141 = vrcp.f32 %v716_v24 }
 0x2ff   : > { %v789_v25 = vpack.c.bf16 %v773_v23, %v773_v23 }
 0x301   : > { %806 = vst.msk [vmem:[%s1693_s7 + $0x4] sm:$0xf] %vm804_vm3, %v789_v25 }
 0x304   : > { %v1142_v27 = vpop.eup %1141 }
 0x305   : > { %v774_v29 = vmul.f32 %v1142_v27, %v1621_v12  ;;  %v719_v54 = vpop.xlane.xlu1 %718 }
 0x306   : > { %1143 = vrcp.f32 %v719_v54 }
 0x307   : > { %v790_v60 = vpack.c.bf16 %v774_v29, %v774_v29 }
 0x309   : > { %807 = vst.msk [vmem:[%s1693_s7 + $0x8] sm:$0xf] %vm804_vm3, %v790_v60 }
 0x30c   : > { %v1144_v31 = vpop.eup %1143 }
 0x30d   : > { %v775_v34 = vmul.f32 %v1144_v31, %v1625_v42 }
 0x30f   : > { %v791_v35 = vpack.c.bf16 %v775_v34, %v775_v34 }
 0x311   : > { %808 = vst.msk [vmem:[%s1693_s7 + $0xc] sm:$0xf] %vm804_vm3, %v791_v35 }
 0x313   : > { %v722_v7 = vpop.xlane.xlu2 %721 }
 0x314   : > { %1145 = vrcp.f32 %v722_v7 }
 0x31a   : > { %v1146_v2 = vpop.eup %1145 }
 0x31b   : > { %v776_v37 = vmul.f32 %v1146_v2, %v1631_v22  ;;  %v725_v12 = vpop.xlane.xlu1 %724 }
 0x31c   : > { %1147 = vrcp.f32 %v725_v12 }
 0x31d   : > { %v792_v39 = vpack.c.bf16 %v776_v37, %v776_v37 }
 0x31f   : > { %809 = vst.msk [vmem:[%s1693_s7 + $0x10] sm:$0xf] %vm804_vm3, %v792_v39 }
 0x322   : > { %v1148_v41 = vpop.eup %1147 }
 0x323   : > { %v777_v8 = vmul.f32 %v1148_v41, %v1636_v28  ;;  %v728_v42 = vpop.xlane.xlu2 %727 }
 0x324   : > { %1149 = vrcp.f32 %v728_v42 }
 0x325   : > { %v793_v43 = vpack.c.bf16 %v777_v8, %v777_v8 }
 0x327   : > { %810 = vst.msk [vmem:[%s1693_s7 + $0x14] sm:$0xf] %vm804_vm3, %v793_v43 }
 0x32a   : > { %v1150_v46 = vpop.eup %1149 }
 0x32b   : > { %v778_v47 = vmul.f32 %v1150_v46, %v1641_v32  ;;  %v731_v22 = vpop.xlane.xlu1 %730 }
 0x32c   : > { %1151 = vrcp.f32 %v731_v22 }
 0x32d   : > { %v794_v14 = vpack.c.bf16 %v778_v47, %v778_v47 }
 0x32f   : > { %811 = vst.msk [vmem:[%s1693_s7 + $0x18] sm:$0xf] %vm804_vm3, %v794_v14 }
 0x332   : > { %v1152_v49 = vpop.eup %1151 }
 0x333   : > { %v779_v51 = vmul.f32 %v1152_v49, %v1646_v38  ;;  %v734_v28 = vpop.xlane.xlu2 %733 }
 0x334   : > { %1153 = vrcp.f32 %v734_v28 }
 0x335   : > { %v795_v52 = vpack.c.bf16 %v779_v51, %v779_v51 }
 0x337   : > { %812 = vst.msk [vmem:[%s1693_s7 + $0x1c] sm:$0xf] %vm804_vm3, %v795_v52 }
 0x33a   : > { %v1154_v20 = vpop.eup %1153 }
 0x33b   : > { %v780_v53 = vmul.f32 %v1154_v20, %v1651_v44  ;;  %v737_v32 = vpop.xlane.xlu1 %736 }
 0x33c   : > { %1155 = vrcp.f32 %v737_v32 }
 0x33d   : > { %v796_v57 = vpack.c.bf16 %v780_v53, %v780_v53 }
 0x33f   : > { %813 = vst.msk [vmem:[%s1693_s7 + $0x20] sm:$0xf] %vm804_vm3, %v796_v57 }
 0x342   : > { %v1156_v58 = vpop.eup %1155 }
 0x343   : > { %v781_v26 = vmul.f32 %v1156_v58, %v1656_v50  ;;  %v740_v38 = vpop.xlane.xlu2 %739 }
 0x344   : > { %1157 = vrcp.f32 %v740_v38 }
 0x345   : > { %v797_v59 = vpack.c.bf16 %v781_v26, %v781_v26 }
 0x347   : > { %814 = vst.msk [vmem:[%s1693_s7 + $0x24] sm:$0xf] %vm804_vm3, %v797_v59 }
 0x34a   : > { %v1158_v62 = vpop.eup %1157 }
 0x34b   : > { %v782_v0 = vmul.f32 %v1158_v62, %v1661_v55  ;;  %v743_v44 = vpop.xlane.xlu1 %742 }
 0x34c   : > { %1159 = vrcp.f32 %v743_v44 }
 0x34d   : > { %v798_v33 = vpack.c.bf16 %v782_v0, %v782_v0 }
 0x34f   : > { %815 = vst.msk [vmem:[%s1693_s7 + $0x28] sm:$0xf] %vm804_vm3, %v798_v33 }
 0x352   : > { %v1160_v1 = vpop.eup %1159 }
 0x353   : > { %v783_v30 = vmul.f32 %v1160_v1, %v1666_v61  ;;  %v746_v50 = vpop.xlane.xlu2 %745 }
 0x354   : > { %1161 = vrcp.f32 %v746_v50 }
 0x355   : > { %v799_v5 = vpack.c.bf16 %v783_v30, %v783_v30 }
 0x357   : > { %816 = vst.msk [vmem:[%s1693_s7 + $0x2c] sm:$0xf] %vm804_vm3, %v799_v5 }
 0x35a   : > { %v1162_v40 = vpop.eup %1161 }
 0x35b   : > { %v784_v6 = vmul.f32 %v1162_v40, %v1671_v4  ;;  %v749_v55 = vpop.xlane.xlu1 %748 }
 0x35c   : > { %1163 = vrcp.f32 %v749_v55 }
 0x35d   : > { %v800_v36 = vpack.c.bf16 %v784_v6, %v784_v6 }
 0x35f   : > { %817 = vst.msk [vmem:[%s1693_s7 + $0x30] sm:$0xf] %vm804_vm3, %v800_v36 }
 0x362   : > { %v1164_v10 = vpop.eup %1163 }
 0x363   : > { %v785_v48 = vmul.f32 %v1164_v10, %v1676_v9  ;;  %v752_v61 = vpop.xlane.xlu2 %751 }
 0x364   : > { %1165 = vrcp.f32 %v752_v61 }
 0x365   : > { %v801_v11 = vpack.c.bf16 %v785_v48, %v785_v48 }
 0x367   : > { %818 = vst.msk [vmem:[%s1693_s7 + $0x34] sm:$0xf] %vm804_vm3, %v801_v11 }
 0x36a   : > { %v1166_v13 = vpop.eup %1165 }
 0x36b   : > { %v786_v16 = vmul.f32 %v1166_v13, %v1682_v15  ;;  %v755_v56 = vpop.xlane.xlu1 %754 }
 0x36c   : > { %1167 = vrcp.f32 %v755_v56 }
 0x36d   : > { %v802_v4 = vpack.c.bf16 %v786_v16, %v786_v16 }
 0x36f   : > { %819 = vst.msk [vmem:[%s1693_s7 + $0x38] sm:$0xf] %vm804_vm3, %v802_v4 }
 0x372   : > { %v1168_v17 = vpop.eup %1167 }
 0x373   : > { %v787_v18 = vmul.f32 %v1168_v17, %v1688_v45 }
 0x375   : > { %v803_v19 = vpack.c.bf16 %v787_v18, %v787_v18 }
 0x377   : > { %820 = vst.msk [vmem:[%s1693_s7 + $0x3c] sm:$0xf] %vm804_vm3, %v803_v19 }
 0x378 PF: > { %s21_s20 = sadd.s32 1, %s1351_s20   ;;  %s1778_s15 = smov %s1335_s16 }
 0x379   : > { %p18_p2 = scmp.ge.s32.totalorder %s21_s20, 4   ;;  %s1779_s16 = smov %s1339_s17 }
 0x37a   : > { %s1780_s17 = smov %s1464_s26  ;;  %s1781_s18 = smov %s1347_s19 }
 0x37b   : > { %s1782_s19 = smov %s1784_s11  ;;  %20 = sbr.rel (!%p18_p2) target bundleno = 9 (0x9), region = 105 }
 0x380   :  { %842 = vsyncpa [#allocation4], 1 }
 0x381   :  { %844 = vsyncpa [#allocation4 + $0x1], 1 }
 0x382   :  { %845 = vsyncpa [#allocation6], 1 }
 0x383   :  { %847 = vsyncpa [#allocation6 + $0x1], 1 }
 0x384   :  { %848 = vsyncpa [#allocation9], 1 }

</bundles_post_ra>
